<compile_context>
chip_gen: v6e
topology: v6e:2x2x1
jax: 0.10.0
libtpu: 0.0.40
codegen_flags: <defaults>
</compile_context>

<pallas_src>
import jax
import jax.numpy as jnp
from jax.experimental import pallas as pl
from jax.experimental.pallas import tpu as pltpu


def gam_kernel(fs_ref, m_ref, w1_ref, b1_ref, w2_ref, b2_ref, o_ref):
    """One (bt, C, HW) batch-slab per grid step.

    fs_ref : (bt, C, HW)  feature maps, streaming dtype (f32 or bf16)
    m_ref  : (bt, 1, HW)  nearest-resized mask, same dtype as fs
    w1_ref : (G, C)       conv1 1x1 weight, f32 (PyTorch (out,in,1,1) squeezed)
    b1_ref : (G, 1)       conv1 bias, f32
    w2_ref : (G, G)       conv2 1x1 weight, f32
    b2_ref : (G, 1)       conv2 bias, f32
    o_ref  : (bt, C, HW)  gated output, streaming dtype (G == C)
    """
    bt = fs_ref.shape[0]
    inv_hw = 1.0 / fs_ref.shape[-1]

    def body(b, carry):
        # --- Masked global average pool -> (C, 1), f32 accumulate (VPU + XLU).
        fs32 = fs_ref[b].astype(jnp.float32)          # (C, HW)
        m32 = m_ref[b].astype(jnp.float32)            # (1, HW), broadcasts over C
        att = jnp.sum(fs32 * m32, axis=-1, keepdims=True) * inv_hw   # (C, 1)

        # --- Gate: 1x1 conv -> ReLU -> 1x1 conv -> (Dropout = id at eval) -> Sigmoid.
        # Weights/biases are read at the use site (no long-lived hoists -> no spills).
        # TODO(synk): training-mode nn.Dropout(p=0.5) not implemented (eval identity).
        h = jnp.dot(w1_ref[...], att, preferred_element_type=jnp.float32) + b1_ref[...]
        h = jnp.maximum(h, 0.0)                                      # (G, 1)
        g = jnp.dot(w2_ref[...], h, preferred_element_type=jnp.float32) + b2_ref[...]
        g = jax.nn.sigmoid(g)                                        # (G, 1)

        # --- g * Fs: re-read the slab from VMEM (3 vld/cycle, essentially free),
        # multiply in f32, cast once at the store (bf16 path stays bf16 in HBM).
        o_ref[b] = (fs_ref[b].astype(jnp.float32) * g).astype(o_ref.dtype)
        return carry

    jax.lax.fori_loop(0, bt, body, 0)


def nearest_resize_mask(mask, H, W):
    """F.interpolate(mask, size=(H, W), mode='nearest') for an NCHW mask."""
    _, _, Hm, Wm = mask.shape
    ih = (jnp.arange(H) * Hm) // H          # floor(dst * in/out), PyTorch 'nearest'
    iw = (jnp.arange(W) * Wm) // W
    return mask[:, :, ih][:, :, :, iw]


def _device_profile():
    """Generation-aware tuning knobs (num TensorCores, VMEM cap, block target)."""
    kind = ""
    try:
        kind = jax.devices()[0].device_kind.lower()
    except Exception:
        pass
    if "v7" in kind or "7x" in kind:
        # 2 TCs/chip, 64 MiB VMEM, ~3.2 TB/s HBM: keep an even parallel grid.
        return {"num_tc": 2, "vmem_cap": 56 << 20, "target_block": 7 << 20}
    if "v6" in kind:
        # 1 TC, 128 MiB VMEM: grow blocks, no multi-step clamp.
        return {"num_tc": 1, "vmem_cap": 96 << 20, "target_block": 12 << 20}
    if ("v5 lite" in kind) or ("v5e" in kind) or ("v5lite" in kind):
        # 1 TC, 128 MiB VMEM.
        return {"num_tc": 1, "vmem_cap": 96 << 20, "target_block": 8 << 20}
    if ("v4" in kind) or ("v5" in kind):
        # v4 / v5p megacore: 2 TCs/chip.
        return {"num_tc": 2, "vmem_cap": 96 << 20, "target_block": 8 << 20}
    # Unknown part: conservative values valid everywhere.
    return {"num_tc": 1, "vmem_cap": 56 << 20, "target_block": 6 << 20}


def _choose_block_batch(B, per_elem_bytes, target_bytes, num_tc):
    """Pick how many batch elements to pack into one grid step."""
    bt = max(1, min(B, target_bytes // max(per_elem_bytes, 1)))
    if num_tc > 1 and B >= num_tc:
        # Keep >= num_tc grid steps so the "parallel" axis shards across TCs.
        bt = min(bt, B // num_tc)
    bt = max(1, bt)
    while B % bt:                            # keep blocks evenly divisible
        bt -= 1
    return int(bt)


def attention_forward(Fs, Ys, w1, b1, w2, b2):
    """GAM forward. Output dtype == Fs.dtype (pass bf16 Fs/Ys for bf16 streaming)."""
    B, C, H, W = Fs.shape
    HW = H * W
    G = w2.shape[0]
    if G != C:
        raise ValueError(
            "The GAM gate is hardcoded to 256 output channels; in_channels "
            "must equal the gate width for the final g * Fs broadcast.")

    stream_dtype = Fs.dtype
    itemsize = jnp.dtype(stream_dtype).itemsize

    # Nearest resize of the mask stays in XLA (tiny vs Fs traffic).
    # TODO(synk): fold the resize into the kernel (scalar-prefetched row index
    # gather) to shave the extra launch for very small problem sizes.
    mask_rs = nearest_resize_mask(Ys, H, W)                  # (B, 1, H, W)
    fs_flat = Fs.reshape(B, C, HW)
    m_flat = mask_rs.reshape(B, 1, HW).astype(stream_dtype)

    prof = _device_profile()
    bt = _choose_block_batch(B, C * HW * itemsize, prof["target_block"], prof["num_tc"])
    grid = (B // bt,)

    # NOTE: HW % 128 != 0 still compiles (block spans the full HW dim) but
    # falls back to masked partial stores; prefer shapes with HW % 128 == 0.

    # VMEM budget: double-buffered Fs-in/out + mask blocks, resident weights/biases.
    fs_block_bytes = bt * C * HW * itemsize
    mask_block_bytes = bt * 8 * HW * itemsize                # (1, HW) pads to 8 sublanes
    weight_bytes = (w1.size + w2.size) * 4 + 2 * G * 128 * 4  # biases lane-pad to 128
    vmem_est = 2 * (2 * fs_block_bytes + mask_block_bytes) + 2 * weight_bytes + (2 << 20)
    vmem_limit = int(min(max(vmem_est, 32 << 20), prof["vmem_cap"]))

    out_flat = pl.pallas_call(
        gam_kernel,
        out_shape=jax.ShapeDtypeStruct((B, C, HW), stream_dtype),
        grid_spec=pltpu.PrefetchScalarGridSpec(
            num_scalar_prefetch=0,
            grid=grid,
            in_specs=[
                pl.BlockSpec((bt, C, HW), lambda i: (i, 0, 0)),   # Fs slab
                pl.BlockSpec((bt, 1, HW), lambda i: (i, 0, 0)),   # mask slab
                pl.BlockSpec(w1.shape, lambda i: (0, 0)),         # w1 (resident)
                pl.BlockSpec(b1.shape, lambda i: (0, 0)),         # b1
                pl.BlockSpec(w2.shape, lambda i: (0, 0)),         # w2
                pl.BlockSpec(b2.shape, lambda i: (0, 0)),         # b2
            ],
            out_specs=pl.BlockSpec((bt, C, HW), lambda i: (i, 0, 0)),
        ),
        compiler_params=pltpu.CompilerParams(
            dimension_semantics=("parallel",),
            vmem_limit_bytes=vmem_limit,
        ),
    )(fs_flat, m_flat, w1, b1, w2, b2)

    return out_flat.reshape(B, C, H, W)


def reference_forward(Fs, Ys, w1, b1, w2, b2):
    """Pure-JAX f32 reference mirroring the PyTorch module (eval mode)."""
    Fs = Fs.astype(jnp.float32)
    Ys = Ys.astype(jnp.float32)
    B, C, H, W = Fs.shape
    mask_rs = nearest_resize_mask(Ys, H, W)
    att = jnp.mean(Fs * mask_rs, axis=(2, 3))                     # (B, C)
    h = jnp.maximum(att @ w1.T + b1[:, 0], 0.0)                   # (B, G)
    g = jax.nn.sigmoid(h @ w2.T + b2[:, 0])                       # (B, G)
    return g[:, :, None, None] * Fs


if __name__ == "__main__":
    B = 2
    C = 256          # in_channels (must be 256 to match the hardcoded gate width)
    GATE = 256       # gate hidden/output channels (hardcoded in the module)
    H = W = 16
    Hm = Wm = 8      # mask spatial size before nearest resize

    key = jax.random.PRNGKey(0)
    k1, k2, k3, k4, k5, k6 = jax.random.split(key, 6)

    Fs = jax.random.normal(k1, (B, C, H, W), dtype=jnp.float32)
    Ys = (jax.random.uniform(k2, (B, 1, Hm, Wm)) > 0.5).astype(jnp.float32)

    # Deterministic synthetic parameters (PyTorch conv weight (out,in,1,1) squeezed).
    w1 = jax.random.normal(k3, (GATE, C), dtype=jnp.float32) * (1.0 / jnp.sqrt(C))
    b1 = jax.random.normal(k4, (GATE, 1), dtype=jnp.float32) * 0.01
    w2 = jax.random.normal(k5, (GATE, GATE), dtype=jnp.float32) * (1.0 / jnp.sqrt(GATE))
    b2 = jax.random.normal(k6, (GATE, 1), dtype=jnp.float32) * 0.01

    fwd = jax.jit(attention_forward)
    ref = reference_forward(Fs, Ys, w1, b1, w2, b2)

    # f32 streaming path: tight check against the pure-JAX reference.
    out = jax.block_until_ready(fwd(Fs, Ys, w1, b1, w2, b2))
    assert out.shape == (B, C, H, W)
    assert jnp.allclose(out, ref, atol=1e-5, rtol=1e-5), "f32 mismatch vs reference"

    # bf16 streaming path (halves HBM traffic): loose check against f32 reference.
    out_bf16 = jax.block_until_ready(
        fwd(Fs.astype(jnp.bfloat16), Ys.astype(jnp.bfloat16), w1, b1, w2, b2))
    assert out_bf16.dtype == jnp.bfloat16
    assert jnp.allclose(out_bf16.astype(jnp.float32), ref, atol=2e-2, rtol=2e-2), \
        "bf16 mismatch vs reference"

    print("KERNEL_OK")
</pallas_src>

<mosaic_0001>
module attributes {stable_mosaic.version = 11 : i64} {
  func.func @gam_kernel(%arg0: i32, %arg1: memref<2x256x256xf32, #tpu.memory_space<vmem>>, %arg2: memref<2x1x256xf32, #tpu.memory_space<vmem>>, %arg3: memref<256x256xf32, #tpu.memory_space<vmem>>, %arg4: memref<256x1xf32, #tpu.memory_space<vmem>>, %arg5: memref<256x256xf32, #tpu.memory_space<vmem>>, %arg6: memref<256x1xf32, #tpu.memory_space<vmem>>, %arg7: memref<2x256x256xf32, #tpu.memory_space<vmem>>) attributes {dimension_semantics = [#tpu.dimension_semantics<parallel>], iteration_bounds = array<i64: 1>, scalar_prefetch = 0 : i64, scratch_operands = 0 : i64, tpu.core_type = #tpu.core_type<tc>, window_params = [{transform_indices = @transform_0, window_bounds = array<i64: 2, 256, 256>}, {transform_indices = @transform_1, window_bounds = array<i64: 2, 1, 256>}, {pipeline_mode = #tpu.pipeline_mode<synchronous>, transform_indices = @transform_2, window_bounds = array<i64: 256, 256>}, {pipeline_mode = #tpu.pipeline_mode<synchronous>, transform_indices = @transform_3, window_bounds = array<i64: 256, 1>}, {pipeline_mode = #tpu.pipeline_mode<synchronous>, transform_indices = @transform_4, window_bounds = array<i64: 256, 256>}, {pipeline_mode = #tpu.pipeline_mode<synchronous>, transform_indices = @transform_5, window_bounds = array<i64: 256, 1>}, {transform_indices = @transform_6, window_bounds = array<i64: 2, 256, 256>}]} {
    %c0_i32 = arith.constant 0 : i32
    %c2_i32 = arith.constant 2 : i32
    %0 = arith.addi %c0_i32, %c2_i32 : i32
    %c1_i32 = arith.constant 1 : i32
    scf.for %arg8 = %c0_i32 to %0 step %c1_i32  : i32 {
      %1 = arith.index_cast %arg8 : i32 to index
      %c0 = arith.constant 0 : index
      %c0_1 = arith.constant 0 : index
      %2 = vector.load %arg1[%1, %c0, %c0_1] : memref<2x256x256xf32, #tpu.memory_space<vmem>>, vector<1x256x256xf32>
      %3 = vector.shape_cast %2 : vector<1x256x256xf32> to vector<256x256xf32>
      %4 = arith.index_cast %arg8 : i32 to index
      %c0_2 = arith.constant 0 : index
      %c0_3 = arith.constant 0 : index
      %5 = vector.load %arg2[%4, %c0_2, %c0_3] : memref<2x1x256xf32, #tpu.memory_space<vmem>>, vector<1x1x256xf32>
      %6 = vector.shape_cast %5 : vector<1x1x256xf32> to vector<1x256xf32>
      %7 = vector.broadcast %6 : vector<1x256xf32> to vector<256x256xf32>
      %8 = arith.mulf %3, %7 : vector<256x256xf32>
      %cst = arith.constant dense<0.000000e+00> : vector<256xf32>
      %9 = vector.multi_reduction <add>, %8, %cst [1] : vector<256x256xf32> to vector<256xf32>
      %10 = vector.shape_cast %9 : vector<256xf32> to vector<256x1xf32>
      %cst_4 = arith.constant 3.906250e-03 : f32
      %11 = vector.broadcast %cst_4 : f32 to vector<256x1xf32>
      %12 = arith.mulf %10, %11 : vector<256x1xf32>
      %c0_5 = arith.constant 0 : index
      %c0_6 = arith.constant 0 : index
      %13 = vector.load %arg3[%c0_5, %c0_6] : memref<256x256xf32, #tpu.memory_space<vmem>>, vector<256x256xf32>
      %cst_7 = arith.constant dense<0.000000e+00> : vector<256x1xf32>
      %14 = tpu.matmul %13, %12, %cst_7 {dimension_numbers = #tpu.dot_dimension_numbers<[1], [0], [0], [1], [0, 0, 1, 1], [], []>} : vector<256x256xf32>, vector<256x1xf32>, vector<256x1xf32> -> vector<256x1xf32>
      %c0_8 = arith.constant 0 : index
      %c0_9 = arith.constant 0 : index
      %15 = vector.load %arg4[%c0_8, %c0_9] : memref<256x1xf32, #tpu.memory_space<vmem>>, vector<256x1xf32>
      %16 = arith.addf %14, %15 : vector<256x1xf32>
      %cst_10 = arith.constant 0.000000e+00 : f32
      %17 = vector.broadcast %cst_10 : f32 to vector<256x1xf32>
      %18 = arith.maximumf %16, %17 : vector<256x1xf32>
      %c0_11 = arith.constant 0 : index
      %c0_12 = arith.constant 0 : index
      %19 = vector.load %arg5[%c0_11, %c0_12] : memref<256x256xf32, #tpu.memory_space<vmem>>, vector<256x256xf32>
      %cst_13 = arith.constant dense<0.000000e+00> : vector<256x1xf32>
      %20 = tpu.matmul %19, %18, %cst_13 {dimension_numbers = #tpu.dot_dimension_numbers<[1], [0], [0], [1], [0, 0, 1, 1], [], []>} : vector<256x256xf32>, vector<256x1xf32>, vector<256x1xf32> -> vector<256x1xf32>
      %c0_14 = arith.constant 0 : index
      %c0_15 = arith.constant 0 : index
      %21 = vector.load %arg6[%c0_14, %c0_15] : memref<256x1xf32, #tpu.memory_space<vmem>>, vector<256x1xf32>
      %22 = arith.addf %20, %21 : vector<256x1xf32>
      %23 = arith.negf %22 : vector<256x1xf32>
      %24 = math.exp %23 : vector<256x1xf32>
      %cst_16 = arith.constant 1.000000e+00 : f32
      %25 = vector.broadcast %cst_16 : f32 to vector<256x1xf32>
      %26 = arith.addf %25, %24 : vector<256x1xf32>
      %27 = arith.divf %25, %26 : vector<256x1xf32>
      %28 = arith.index_cast %arg8 : i32 to index
      %c0_17 = arith.constant 0 : index
      %c0_18 = arith.constant 0 : index
      %29 = vector.load %arg1[%28, %c0_17, %c0_18] : memref<2x256x256xf32, #tpu.memory_space<vmem>>, vector<1x256x256xf32>
      %30 = vector.shape_cast %29 : vector<1x256x256xf32> to vector<256x256xf32>
      %31 = vector.broadcast %27 : vector<256x1xf32> to vector<256x256xf32>
      %32 = arith.mulf %30, %31 : vector<256x256xf32>
      %33 = arith.index_cast %arg8 : i32 to index
      %c0_19 = arith.constant 0 : index
      %c0_20 = arith.constant 0 : index
      %34 = vector.load %arg7[%33, %c0_19, %c0_20] : memref<2x256x256xf32, #tpu.memory_space<vmem>>, vector<1x256x256xf32>
      %35 = vector.shape_cast %34 : vector<1x256x256xf32> to vector<256x256xf32>
      %36 = vector.shape_cast %32 : vector<256x256xf32> to vector<1x256x256xf32>
      tpu.vector_store %arg7[%33, %c0_19, %c0_20], %36 {strides = array<i32>} : memref<2x256x256xf32, #tpu.memory_space<vmem>>, vector<1x256x256xf32>,
    }
    %c2_i32_0 = arith.constant 2 : i32
    return
  }
  func.func @transform_0(%arg0: i32) -> (i32, i32, i32) {
    %c0_i32 = arith.constant 0 : i32
    %c0_i32_0 = arith.constant 0 : i32
    %c0_i32_1 = arith.constant 0 : i32
    return %arg0, %c0_i32, %c0_i32_0 : i32, i32, i32
  }
  func.func @transform_1(%arg0: i32) -> (i32, i32, i32) {
    %c0_i32 = arith.constant 0 : i32
    %c0_i32_0 = arith.constant 0 : i32
    %c0_i32_1 = arith.constant 0 : i32
    return %arg0, %c0_i32, %c0_i32_0 : i32, i32, i32
  }
  func.func @transform_2(%arg0: i32) -> (i32, i32) {
    %c0_i32 = arith.constant 0 : i32
    %c0_i32_0 = arith.constant 0 : i32
    %c0_i32_1 = arith.constant 0 : i32
    return %c0_i32, %c0_i32_0 : i32, i32
  }
  func.func @transform_3(%arg0: i32) -> (i32, i32) {
    %c0_i32 = arith.constant 0 : i32
    %c0_i32_0 = arith.constant 0 : i32
    %c0_i32_1 = arith.constant 0 : i32
    return %c0_i32, %c0_i32_0 : i32, i32
  }
  func.func @transform_4(%arg0: i32) -> (i32, i32) {
    %c0_i32 = arith.constant 0 : i32
    %c0_i32_0 = arith.constant 0 : i32
    %c0_i32_1 = arith.constant 0 : i32
    return %c0_i32, %c0_i32_0 : i32, i32
  }
  func.func @transform_5(%arg0: i32) -> (i32, i32) {
    %c0_i32 = arith.constant 0 : i32
    %c0_i32_0 = arith.constant 0 : i32
    %c0_i32_1 = arith.constant 0 : i32
    return %c0_i32, %c0_i32_0 : i32, i32
  }
  func.func @transform_6(%arg0: i32) -> (i32, i32, i32) {
    %c0_i32 = arith.constant 0 : i32
    %c0_i32_0 = arith.constant 0 : i32
    %c0_i32_1 = arith.constant 0 : i32
    return %arg0, %c0_i32, %c0_i32_0 : i32, i32, i32
  }
}

</mosaic_0001>

<bundles_post_ra>
// kernel: attention_forward.1
= control target key start
LH: loop header
LB: loop body
LE: loop exit
PB: predicated region body
PF: predicated region fallthrough
CT: control target
= control target key end

     0   :  { %s1760_s21 = smov 0   ;;  %s2729_s0 = inlined_call_operand.vmem [shape: f32[2,256,256], index: 0, kind: input, shape index: {}]   ;;  %s2730_s1 = inlined_call_operand.vmem [shape: f32[2,1,256], index: 1, kind: input, shape index: {}]   ;;  %s2731_s2 = inlined_call_operand.vmem [shape: f32[256,256], index: 2, kind: input, shape index: {}]   ;;  %s2732_s3 = inlined_call_operand.vmem [shape: f32[256,1], index: 3, kind: input, shape index: {}]   ;;  %s2733_s4 = inlined_call_operand.vmem [shape: f32[256,256], index: 4, kind: input, shape index: {}]   ;;  %s2734_s5 = inlined_call_operand.vmem [shape: f32[256,1], index: 5, kind: input, shape index: {}]   ;;  %s2735_s6 = inlined_call_operand.vmem [shape: f32[2,256,256], index: 6, kind: output, shape index: {}]  }
   0x1 LB: > { %v100_v0 = vlaneseq  ;;  %s1509_s22 = sshll.u32 %s1721_s21, 9  ;;  %s1475_s23 = sshll.u32 %s1721_s21, 1  ;;  %s1721_s21 = sphi %s1760_s21, %s28_s21  }
   0x2   : > { %s1772_s26 = scalar_lea.vmem %s2729_s0, %s1509_s22  ;;  %s97_s29 = scalar_lea.vmem %s2730_s1, %s1475_s23 }
   0x3   : > { %v101_v1 = vshrl.u32 %v100_v0, 7  ;;  %v62_v2 = vld [vmem:[%s1772_s26 + $0xf0] sm:$0xff]  ;;  %v63_v3 = vld [vmem:[%s1772_s26 + $0xf8] sm:$0xff]  ;;  %v98_v4 = vld [vmem:[%s97_s29] sm:$0x3]  ;;  %s2596_s14 = scalar_lea.vmem %s2735_s6, %s1509_s22  ;;  %s28_s21 = sadd.s32 1, %s1721_s21  }
   0x4   : > { %v60_v7 = vld [vmem:[%s1772_s26 + $0xe0] sm:$0xff]  ;;  %v61_v8 = vld [vmem:[%s1772_s26 + $0xe8] sm:$0xff]  ;;  %v58_v9 = vld [vmem:[%s1772_s26 + $0xd0] sm:$0xff]  ;;  %p25_p0 = scmp.ge.s32.totalorder %s28_s21, 2  }
   0x5   : > { %v102_v5 = vsub.s32 0, %v101_v1  ;;  %v106_v6 = vsub.s32 1, %v101_v1  ;;  %v59_v12 = vld [vmem:[%s1772_s26 + $0xd8] sm:$0xff]  ;;  %v56_v13 = vld [vmem:[%s1772_s26 + $0xc0] sm:$0xff]  ;;  %v57_v14 = vld [vmem:[%s1772_s26 + $0xc8] sm:$0xff] }
   0x6   : > { %v54_v23 = vld [vmem:[%s1772_s26 + $0xb0] sm:$0xff]  ;;  %v55_v24 = vld [vmem:[%s1772_s26 + $0xb8] sm:$0xff]  ;;  %v52_v26 = vld [vmem:[%s1772_s26 + $0xa0] sm:$0xff] }
   0x7   : > { %v1782_v10 = vrot.slane %v98_v4, %v102_v5  ;;  %v1784_v11 = vrot.slane %v98_v4, %v106_v6  ;;  %v53_v27 = vld [vmem:[%s1772_s26 + $0xa8] sm:$0xff]  ;;  %v50_v35 = vld [vmem:[%s1772_s26 + $0x90] sm:$0xff]  ;;  %v51_v36 = vld [vmem:[%s1772_s26 + $0x98] sm:$0xff] }
   0x8   : > { %v48_v37 = vld [vmem:[%s1772_s26 + $0x80] sm:$0xff]  ;;  %v49_v38 = vld [vmem:[%s1772_s26 + $0x88] sm:$0xff]  ;;  %v46_v45 = vld [vmem:[%s1772_s26 + $0x70] sm:$0xff] }
   0x9   : > { %v140_v15 = vmul.f32 %v1782_v10, %v62_v2  ;;  %v141_v16 = vmul.f32 %v1784_v11, %v63_v3  ;;  %v138_v17 = vmul.f32 %v1782_v10, %v60_v7  ;;  %v139_v18 = vmul.f32 %v1784_v11, %v61_v8  ;;  %v47_v46 = vld [vmem:[%s1772_s26 + $0x78] sm:$0xff]  ;;  %v44_v47 = vld [vmem:[%s1772_s26 + $0x60] sm:$0xff]  ;;  %v45_v48 = vld [vmem:[%s1772_s26 + $0x68] sm:$0xff] }
   0xa   : > { %v136_v19 = vmul.f32 %v1782_v10, %v58_v9  ;;  %v137_v20 = vmul.f32 %v1784_v11, %v59_v12  ;;  %v134_v21 = vmul.f32 %v1782_v10, %v56_v13  ;;  %v135_v22 = vmul.f32 %v1784_v11, %v57_v14  ;;  %v42_v55 = vld [vmem:[%s1772_s26 + $0x50] sm:$0xff]  ;;  %v43_v56 = vld [vmem:[%s1772_s26 + $0x58] sm:$0xff]  ;;  %v40_v57 = vld [vmem:[%s1772_s26 + $0x40] sm:$0xff] }
   0xb   : > { %v219_v25 = vadd.f32 %v141_v16, %v140_v15  ;;  %v216_v29 = vadd.f32 %v139_v18, %v138_v17  ;;  %v132_v30 = vmul.f32 %v1782_v10, %v54_v23  ;;  %v133_v31 = vmul.f32 %v1784_v11, %v55_v24  ;;  %v41_v58 = vld [vmem:[%s1772_s26 + $0x48] sm:$0xff]  ;;  %v38_v1 = vld [vmem:[%s1772_s26 + $0x30] sm:$0xff]  ;;  %v39_v2 = vld [vmem:[%s1772_s26 + $0x38] sm:$0xff] }
   0xc   : > { %v213_v28 = vadd.f32 %v137_v20, %v136_v19  ;;  %v210_v32 = vadd.f32 %v135_v22, %v134_v21  ;;  %v130_v33 = vmul.f32 %v1782_v10, %v52_v26  ;;  %v131_v34 = vmul.f32 %v1784_v11, %v53_v27  ;;  %v36_v3 = vld [vmem:[%s1772_s26 + $0x20] sm:$0xff]  ;;  %v37_v4 = vld [vmem:[%s1772_s26 + $0x28] sm:$0xff]  ;;  %v34_v13 = vld [vmem:[%s1772_s26 + $0x10] sm:$0xff] }
   0xd   : > { %220 = vadd.xlane.f32.xlu0 %v219_v25  ;;  %v207_v39 = vadd.f32 %v133_v31, %v132_v30  ;;  %v128_v40 = vmul.f32 %v1782_v10, %v50_v35  ;;  %v129_v41 = vmul.f32 %v1784_v11, %v51_v36  ;;  %v126_v43 = vmul.f32 %v1782_v10, %v48_v37  ;;  %v35_v14 = vld [vmem:[%s1772_s26 + $0x18] sm:$0xff]  ;;  %v32_v15 = vld [vmem:[%s1772_s26] sm:$0xff]  ;;  %v33_v16 = vld [vmem:[%s1772_s26 + $0x8] sm:$0xff] }
   0xe   : > { %214 = vadd.xlane.f32.xlu1 %v213_v28  ;;  %v204_v42 = vadd.f32 %v131_v34, %v130_v33  ;;  %v127_v44 = vmul.f32 %v1784_v11, %v49_v38  ;;  %v124_v50 = vmul.f32 %v1782_v10, %v46_v45  ;;  %v125_v51 = vmul.f32 %v1784_v11, %v47_v46  ;;  %v94_v24 = vld [vmem:[%s1772_s26 + $0x1f0] sm:$0xff]  ;;  %v95_v25 = vld [vmem:[%s1772_s26 + $0x1f8] sm:$0xff]  ;;  %v92_v26 = vld [vmem:[%s1772_s26 + $0x1e0] sm:$0xff] }
   0xf   : > { %v201_v49 = vadd.f32 %v129_v41, %v128_v40  ;;  %v122_v53 = vmul.f32 %v1782_v10, %v44_v47  ;;  %v123_v54 = vmul.f32 %v1784_v11, %v45_v48  ;;  %v120_v60 = vmul.f32 %v1782_v10, %v42_v55  ;;  %v93_v27 = vld [vmem:[%s1772_s26 + $0x1e8] sm:$0xff]  ;;  %v90_v34 = vld [vmem:[%s1772_s26 + $0x1d0] sm:$0xff]  ;;  %v91_v35 = vld [vmem:[%s1772_s26 + $0x1d8] sm:$0xff] }
  0x10   : > { %v198_v52 = vadd.f32 %v127_v44, %v126_v43  ;;  %v195_v59 = vadd.f32 %v125_v51, %v124_v50  ;;  %v121_v61 = vmul.f32 %v1784_v11, %v43_v56  ;;  %v118_v63 = vmul.f32 %v1782_v10, %v40_v57  ;;  %v88_v36 = vld [vmem:[%s1772_s26 + $0x1c0] sm:$0xff]  ;;  %v89_v37 = vld [vmem:[%s1772_s26 + $0x1c8] sm:$0xff]  ;;  %v86_v44 = vld [vmem:[%s1772_s26 + $0x1b0] sm:$0xff] }
  0x11   : > { %217 = vadd.xlane.f32.xlu0 %v216_v29  ;;  %v192_v62 = vadd.f32 %v123_v54, %v122_v53  ;;  %v119_v0 = vmul.f32 %v1784_v11, %v41_v58  ;;  %v116_v6 = vmul.f32 %v1782_v10, %v38_v1  ;;  %v117_v7 = vmul.f32 %v1784_v11, %v39_v2  ;;  %v87_v45 = vld [vmem:[%s1772_s26 + $0x1b8] sm:$0xff]  ;;  %v84_v46 = vld [vmem:[%s1772_s26 + $0x1a0] sm:$0xff]  ;;  %v85_v47 = vld [vmem:[%s1772_s26 + $0x1a8] sm:$0xff] }
  0x12   : > { %211 = vadd.xlane.f32.xlu1 %v210_v32  ;;  %v189_v5 = vadd.f32 %v121_v61, %v120_v60  ;;  %v114_v9 = vmul.f32 %v1782_v10, %v36_v3  ;;  %v115_v12 = vmul.f32 %v1784_v11, %v37_v4  ;;  %v112_v18 = vmul.f32 %v1782_v10, %v34_v13  ;;  %v82_v54 = vld [vmem:[%s1772_s26 + $0x190] sm:$0xff]  ;;  %v83_v55 = vld [vmem:[%s1772_s26 + $0x198] sm:$0xff]  ;;  %v80_v56 = vld [vmem:[%s1772_s26 + $0x180] sm:$0xff] }
  0x13   : > { %v186_v8 = vadd.f32 %v119_v0, %v118_v63  ;;  %v183_v17 = vadd.f32 %v117_v7, %v116_v6  ;;  %v113_v19 = vmul.f32 %v1784_v11, %v35_v14  ;;  %v1723_v20 = vmov 0.0   ;;  %v81_v57 = vld [vmem:[%s1772_s26 + $0x188] sm:$0xff]  ;;  %v78_v0 = vld [vmem:[%s1772_s26 + $0x170] sm:$0xff]  ;;  %v79_v1 = vld [vmem:[%s1772_s26 + $0x178] sm:$0xff] }
  0x14   : > { %398 = vmatprep.subr.mxu0 %v1723_v20  ;;  %v180_v21 = vadd.f32 %v115_v12, %v114_v9  ;;  %v110_v22 = vmul.f32 %v1782_v10, %v32_v15  ;;  %v111_v23 = vmul.f32 %v1784_v11, %v33_v16  ;;  %751 = vmatprep.subr.mxu1 %v1723_v20  ;;  %v76_v2 = vld [vmem:[%s1772_s26 + $0x160] sm:$0xff]  ;;  %v77_v3 = vld [vmem:[%s1772_s26 + $0x168] sm:$0xff]  ;;  %v74_v12 = vld [vmem:[%s1772_s26 + $0x150] sm:$0xff] }
  0x15   : > { %208 = vadd.xlane.f32.xlu0 %v207_v39  ;;  %v177_v28 = vadd.f32 %v113_v19, %v112_v18  ;;  %v172_v29 = vmul.f32 %v1782_v10, %v94_v24  ;;  %v173_v30 = vmul.f32 %v1784_v11, %v95_v25  ;;  %v170_v32 = vmul.f32 %v1782_v10, %v92_v26  ;;  %v75_v13 = vld [vmem:[%s1772_s26 + $0x158] sm:$0xff]  ;;  %v72_v14 = vld [vmem:[%s1772_s26 + $0x140] sm:$0xff]  ;;  %v73_v15 = vld [vmem:[%s1772_s26 + $0x148] sm:$0xff] }
  0x16   : > { %205 = vadd.xlane.f32.xlu1 %v204_v42  ;;  %v174_v31 = vadd.f32 %v111_v23, %v110_v22  ;;  %v171_v33 = vmul.f32 %v1784_v11, %v93_v27  ;;  %v168_v39 = vmul.f32 %v1782_v10, %v90_v34  ;;  %v169_v40 = vmul.f32 %v1784_v11, %v91_v35  ;;  %v70_v23 = vld [vmem:[%s1772_s26 + $0x130] sm:$0xff]  ;;  %v71_v24 = vld [vmem:[%s1772_s26 + $0x138] sm:$0xff]  ;;  %v68_v25 = vld [vmem:[%s1772_s26 + $0x120] sm:$0xff] }
  0x17   : > { %v267_v38 = vadd.f32 %v173_v30, %v172_v29  ;;  %v166_v42 = vmul.f32 %v1782_v10, %v88_v36  ;;  %v167_v43 = vmul.f32 %v1784_v11, %v89_v37  ;;  %v165_v50 = vmul.f32 %v1784_v11, %v87_v45  ;;  %v69_v26 = vld [vmem:[%s1772_s26 + $0x128] sm:$0xff]  ;;  %v67_v34 = vld [vmem:[%s1772_s26 + $0x118] sm:$0xff]  ;;  %v64_v35 = vld [vmem:[%s1772_s26 + $0x100] sm:$0xff] }
  0x18   : > { %v264_v41 = vadd.f32 %v171_v33, %v170_v32  ;;  %v261_v48 = vadd.f32 %v169_v40, %v168_v39  ;;  %v163_v53 = vmul.f32 %v1784_v11, %v85_v47  ;;  %v161_v60 = vmul.f32 %v1784_v11, %v83_v55  ;;  %v66_v33 = vld [vmem:[%s1772_s26 + $0x110] sm:$0xff]  ;;  %v65_v36 = vld [vmem:[%s1772_s26 + $0x108] sm:$0xff] }
  0x19   : > { %202 = vadd.xlane.f32.xlu0 %v201_v49  ;;  %v164_v49 = vmul.f32 %v1782_v10, %v86_v44  ;;  %v258_v51 = vadd.f32 %v167_v43, %v166_v42  ;;  %v159_v63 = vmul.f32 %v1784_v11, %v81_v57  ;;  %v157_v6 = vmul.f32 %v1784_v11, %v79_v1  ;;  %v303_v45 = vld [vmem:[%s2731_s2 + $0x8] sm:$0xff] }
  0x1a   : > { %199 = vadd.xlane.f32.xlu1 %v198_v52  ;;  %v162_v52 = vmul.f32 %v1782_v10, %v84_v46  ;;  %v155_v9 = vmul.f32 %v1784_v11, %v77_v3  ;;  %v153_v18 = vmul.f32 %v1784_v11, %v75_v13  ;;  %v151_v22 = vmul.f32 %v1784_v11, %v73_v15 }
  0x1b   : > { %v255_v58 = vadd.f32 %v165_v50, %v164_v49  ;;  %v149_v29 = vmul.f32 %v1784_v11, %v71_v24  ;;  %v147_v32 = vmul.f32 %v1784_v11, %v69_v26  ;;  %v145_v39 = vmul.f32 %v1784_v11, %v67_v34  ;;  %462 = vmatprep.mubr.f32.mxu0 %v303_v45 }
  0x1c   : > { %v252_v61 = vadd.f32 %v163_v53, %v162_v52  ;;  %v143_v42 = vmul.f32 %v1784_v11, %v65_v36 }
  0x1d   : > { %196 = vadd.xlane.f32.xlu0 %v195_v59  ;;  %v160_v59 = vmul.f32 %v1782_v10, %v82_v54 }
  0x1e   : > { %193 = vadd.xlane.f32.xlu1 %v192_v62  ;;  %v158_v62 = vmul.f32 %v1782_v10, %v80_v56 }
  0x1f   : > { %v249_v4 = vadd.f32 %v161_v60, %v160_v59 }
  0x20   : > { %v246_v7 = vadd.f32 %v159_v63, %v158_v62 }
  0x21   : > { %190 = vadd.xlane.f32.xlu0 %v189_v5  ;;  %v156_v5 = vmul.f32 %v1782_v10, %v78_v0 }
  0x22   : > { %187 = vadd.xlane.f32.xlu1 %v186_v8  ;;  %v154_v8 = vmul.f32 %v1782_v10, %v76_v2 }
  0x23   : > { %v243_v16 = vadd.f32 %v157_v6, %v156_v5 }
  0x24   : > { %v240_v19 = vadd.f32 %v155_v9, %v154_v8 }
  0x25   : > { %184 = vadd.xlane.f32.xlu0 %v183_v17  ;;  %v152_v17 = vmul.f32 %v1782_v10, %v74_v12 }
  0x26   : > { %181 = vadd.xlane.f32.xlu1 %v180_v21  ;;  %v150_v21 = vmul.f32 %v1782_v10, %v72_v14 }
  0x27   : > { %v237_v27 = vadd.f32 %v153_v18, %v152_v17 }
  0x28   : > { %v234_v30 = vadd.f32 %v151_v22, %v150_v21 }
  0x29   : > { %178 = vadd.xlane.f32.xlu0 %v177_v28  ;;  %v148_v28 = vmul.f32 %v1782_v10, %v70_v23 }
  0x2a   : > { %175 = vadd.xlane.f32.xlu1 %v174_v31  ;;  %v146_v31 = vmul.f32 %v1782_v10, %v68_v25 }
  0x2b   : > { %v231_v37 = vadd.f32 %v149_v29, %v148_v28 }
  0x2c   : > { %v228_v40 = vadd.f32 %v147_v32, %v146_v31 }
  0x2d   : > { %268 = vadd.xlane.f32.xlu0 %v267_v38  ;;  %v144_v38 = vmul.f32 %v1782_v10, %v66_v33 }
  0x2e   : > { %265 = vadd.xlane.f32.xlu1 %v264_v41  ;;  %v142_v41 = vmul.f32 %v1782_v10, %v64_v35 }
  0x2f   : > { %v225_v43 = vadd.f32 %v145_v39, %v144_v38 }
  0x30   : > { %v222_v44 = vadd.f32 %v143_v42, %v142_v41 }
  0x31   : > { %262 = vadd.xlane.f32.xlu0 %v261_v48 }
  0x32   : > { %259 = vadd.xlane.f32.xlu1 %v258_v51 }
  0x35   : > { %256 = vadd.xlane.f32.xlu0 %v255_v58 }
  0x36   : > { %253 = vadd.xlane.f32.xlu1 %v252_v61 }
  0x39   : > { %250 = vadd.xlane.f32.xlu0 %v249_v4 }
  0x3a   : > { %247 = vadd.xlane.f32.xlu1 %v246_v7 }
  0x3d   : > { %244 = vadd.xlane.f32.xlu0 %v243_v16 }
  0x3e   : > { %241 = vadd.xlane.f32.xlu1 %v240_v19 }
  0x41   : > { %238 = vadd.xlane.f32.xlu0 %v237_v27 }
  0x42   : > { %235 = vadd.xlane.f32.xlu1 %v234_v30 }
  0x45   : > { %232 = vadd.xlane.f32.xlu0 %v231_v37 }
  0x46   : > { %229 = vadd.xlane.f32.xlu1 %v228_v40 }
  0x49   : > { %226 = vadd.xlane.f32.xlu0 %v225_v43 }
  0x4a   : > { %223 = vadd.xlane.f32.xlu1 %v222_v44 }
  0x96   : > { %v221_v46 = vpop.xlane.xlu0 %220 }
  0x97   : > { %v285_v47 = vmul.f32 0.00390625, %v221_v46  ;;  %v215_v48 = vpop.xlane.xlu1 %214 }
  0x98   : > { %v283_v50 = vmul.f32 0.00390625, %v215_v48  ;;  %v305_v48 = vld [vmem:[%s2731_s2 + $0x18] sm:$0xff] }
  0x99   : > { %399 = vmatpush1.msra.mxu0 %v285_v47  ;;  %v302_v47 = vld [vmem:[%s2731_s2] sm:$0xff] }
  0x9a   : > { %v218_v49 = vpop.xlane.xlu0 %217  ;;  %400 = vmatprep.subr.mxu0 %v1723_v20 }
  0x9b   : > { %v284_v10 = vmul.f32 0.00390625, %v218_v49  ;;  %v212_v11 = vpop.xlane.xlu1 %211  ;;  %v304_v49 = vld [vmem:[%s2731_s2 + $0x10] sm:$0xff] }
  0x9c   : > { %v282_v51 = vmul.f32 0.00390625, %v212_v11  ;;  %v306_v11 = vld [vmem:[%s2731_s2 + $0x20] sm:$0xff] }
  0x9d   : > { %401 = vmatpush1.msra.mxu0 %v284_v10  ;;  %v307_v10 = vld [vmem:[%s2731_s2 + $0x28] sm:$0xff] }
  0x9e   : > { %402 = vmatprep.subr.mxu0 %v1723_v20  ;;  %v209_v52 = vpop.xlane.xlu0 %208 }
  0x9f   : > { %403 = vmatpush1.msra.mxu0 %v283_v50  ;;  %v281_v53 = vmul.f32 0.00390625, %v209_v52  ;;  %v206_v54 = vpop.xlane.xlu1 %205  ;;  %v309_v50 = vld [vmem:[%s2731_s2 + $0x38] sm:$0xff]  ;;  %v311_v52 = vld [vmem:[%s2731_s2 + $0x48] sm:$0xff] }
  0xa0   : > { %404 = vmatprep.subr.mxu0 %v1723_v20  ;;  %v280_v55 = vmul.f32 0.00390625, %v206_v54  ;;  %v313_v54 = vld [vmem:[%s2731_s2 + $0x58] sm:$0xff] }
  0xa1   : > { %405 = vmatpush1.msra.mxu0 %v282_v51  ;;  %v308_v51 = vld [vmem:[%s2731_s2 + $0x30] sm:$0xff] }
  0xa2   : > { %406 = vmatprep.subr.mxu0 %v1723_v20  ;;  %v203_v56 = vpop.xlane.xlu0 %202 }
  0xa3   : > { %407 = vmatpush1.msra.mxu0 %v281_v53  ;;  %v279_v57 = vmul.f32 0.00390625, %v203_v56  ;;  %v200_v58 = vpop.xlane.xlu1 %199  ;;  %v310_v53 = vld [vmem:[%s2731_s2 + $0x40] sm:$0xff]  ;;  %v315_v56 = vld [vmem:[%s2731_s2 + $0x68] sm:$0xff] }
  0xa4   : > { %408 = vmatprep.subr.mxu0 %v1723_v20  ;;  %v278_v59 = vmul.f32 0.00390625, %v200_v58  ;;  %v317_v58 = vld [vmem:[%s2731_s2 + $0x78] sm:$0xff] }
  0xa5   : > { %409 = vmatpush1.msra.mxu0 %v280_v55  ;;  %v312_v55 = vld [vmem:[%s2731_s2 + $0x50] sm:$0xff] }
  0xa6   : > { %410 = vmatprep.subr.mxu0 %v1723_v20  ;;  %v197_v60 = vpop.xlane.xlu0 %196 }
  0xa7   : > { %411 = vmatpush1.msra.mxu0 %v279_v57  ;;  %v277_v61 = vmul.f32 0.00390625, %v197_v60  ;;  %v194_v62 = vpop.xlane.xlu1 %193  ;;  %v314_v57 = vld [vmem:[%s2731_s2 + $0x60] sm:$0xff]  ;;  %v319_v60 = vld [vmem:[%s2731_s2 + $0x88] sm:$0xff] }
  0xa8   : > { %412 = vmatprep.subr.mxu0 %v1723_v20  ;;  %v276_v63 = vmul.f32 0.00390625, %v194_v62  ;;  %v321_v62 = vld [vmem:[%s2731_s2 + $0x98] sm:$0xff] }
  0xa9   : > { %413 = vmatpush1.msra.mxu0 %v278_v59  ;;  %v316_v59 = vld [vmem:[%s2731_s2 + $0x70] sm:$0xff] }
  0xaa   : > { %414 = vmatprep.subr.mxu0 %v1723_v20  ;;  %v191_v0 = vpop.xlane.xlu0 %190 }
  0xab   : > { %415 = vmatpush1.msra.mxu0 %v277_v61  ;;  %v275_v1 = vmul.f32 0.00390625, %v191_v0  ;;  %v188_v2 = vpop.xlane.xlu1 %187  ;;  %v318_v61 = vld [vmem:[%s2731_s2 + $0x80] sm:$0xff]  ;;  %v323_v0 = vld [vmem:[%s2731_s2 + $0xa8] sm:$0xff] }
  0xac   : > { %416 = vmatprep.subr.mxu0 %v1723_v20  ;;  %v274_v3 = vmul.f32 0.00390625, %v188_v2  ;;  %v325_v2 = vld [vmem:[%s2731_s2 + $0xb8] sm:$0xff] }
  0xad   : > { %417 = vmatpush1.msra.mxu0 %v276_v63  ;;  %v320_v63 = vld [vmem:[%s2731_s2 + $0x90] sm:$0xff] }
  0xae   : > { %418 = vmatprep.subr.mxu0 %v1723_v20  ;;  %v185_v4 = vpop.xlane.xlu0 %184 }
  0xaf   : > { %419 = vmatpush1.msra.mxu0 %v275_v1  ;;  %v273_v5 = vmul.f32 0.00390625, %v185_v4  ;;  %v182_v6 = vpop.xlane.xlu1 %181  ;;  %v322_v1 = vld [vmem:[%s2731_s2 + $0xa0] sm:$0xff]  ;;  %v327_v4 = vld [vmem:[%s2731_s2 + $0xc8] sm:$0xff] }
  0xb0   : > { %420 = vmatprep.subr.mxu0 %v1723_v20  ;;  %v272_v7 = vmul.f32 0.00390625, %v182_v6  ;;  %v329_v6 = vld [vmem:[%s2731_s2 + $0xd8] sm:$0xff] }
  0xb1   : > { %421 = vmatpush1.msra.mxu0 %v274_v3  ;;  %v324_v3 = vld [vmem:[%s2731_s2 + $0xb0] sm:$0xff] }
  0xb2   : > { %422 = vmatprep.subr.mxu0 %v1723_v20  ;;  %v179_v8 = vpop.xlane.xlu0 %178 }
  0xb3   : > { %423 = vmatpush1.msra.mxu0 %v273_v5  ;;  %v271_v9 = vmul.f32 0.00390625, %v179_v8  ;;  %v176_v12 = vpop.xlane.xlu1 %175  ;;  %v326_v5 = vld [vmem:[%s2731_s2 + $0xc0] sm:$0xff]  ;;  %v331_v8 = vld [vmem:[%s2731_s2 + $0xe8] sm:$0xff] }
  0xb4   : > { %424 = vmatprep.subr.mxu0 %v1723_v20  ;;  %v270_v13 = vmul.f32 0.00390625, %v176_v12  ;;  %v333_v12 = vld [vmem:[%s2731_s2 + $0xf8] sm:$0xff] }
  0xb5   : > { %425 = vmatpush1.msra.mxu0 %v272_v7  ;;  %v328_v7 = vld [vmem:[%s2731_s2 + $0xd0] sm:$0xff] }
  0xb6   : > { %426 = vmatprep.subr.mxu0 %v1723_v20  ;;  %v269_v14 = vpop.xlane.xlu0 %268 }
  0xb7   : > { %427 = vmatpush1.msra.mxu0 %v271_v9  ;;  %v301_v15 = vmul.f32 0.00390625, %v269_v14  ;;  %v266_v16 = vpop.xlane.xlu1 %265  ;;  %v330_v9 = vld [vmem:[%s2731_s2 + $0xe0] sm:$0xff]  ;;  %v335_v14 = vld [vmem:[%s2731_s2 + $0x108] sm:$0xff] }
  0xb8   : > { %428 = vmatprep.subr.mxu0 %v1723_v20  ;;  %v300_v17 = vmul.f32 0.00390625, %v266_v16  ;;  %v337_v16 = vld [vmem:[%s2731_s2 + $0x118] sm:$0xff] }
  0xb9   : > { %429 = vmatpush1.msra.mxu0 %v270_v13  ;;  %v332_v13 = vld [vmem:[%s2731_s2 + $0xf0] sm:$0xff] }
  0xba   : > { %430 = vmatprep.subr.mxu0 %v1723_v20  ;;  %v263_v18 = vpop.xlane.xlu0 %262 }
  0xbb   : > { %431 = vmatpush2.msra.mxu0 %v301_v15  ;;  %v299_v19 = vmul.f32 0.00390625, %v263_v18  ;;  %v260_v21 = vpop.xlane.xlu1 %259  ;;  %v334_v15 = vld [vmem:[%s2731_s2 + $0x100] sm:$0xff]  ;;  %v339_v18 = vld [vmem:[%s2731_s2 + $0x128] sm:$0xff] }
  0xbc   : > { %432 = vmatprep.subr.mxu0 %v1723_v20  ;;  %v298_v22 = vmul.f32 0.00390625, %v260_v21  ;;  %v341_v21 = vld [vmem:[%s2731_s2 + $0x138] sm:$0xff] }
  0xbd   : > { %433 = vmatpush2.msra.mxu0 %v300_v17  ;;  %v336_v17 = vld [vmem:[%s2731_s2 + $0x110] sm:$0xff] }
  0xbe   : > { %434 = vmatprep.subr.mxu0 %v1723_v20  ;;  %v257_v23 = vpop.xlane.xlu0 %256 }
  0xbf   : > { %435 = vmatpush2.msra.mxu0 %v299_v19  ;;  %v297_v24 = vmul.f32 0.00390625, %v257_v23  ;;  %v254_v25 = vpop.xlane.xlu1 %253  ;;  %v338_v19 = vld [vmem:[%s2731_s2 + $0x120] sm:$0xff]  ;;  %v343_v23 = vld [vmem:[%s2731_s2 + $0x148] sm:$0xff] }
  0xc0   : > { %436 = vmatprep.subr.mxu0 %v1723_v20  ;;  %v296_v26 = vmul.f32 0.00390625, %v254_v25  ;;  %v345_v25 = vld [vmem:[%s2731_s2 + $0x158] sm:$0xff] }
  0xc1   : > { %437 = vmatpush2.msra.mxu0 %v298_v22  ;;  %v340_v22 = vld [vmem:[%s2731_s2 + $0x130] sm:$0xff] }
  0xc2   : > { %438 = vmatprep.subr.mxu0 %v1723_v20  ;;  %v251_v27 = vpop.xlane.xlu0 %250 }
  0xc3   : > { %439 = vmatpush2.msra.mxu0 %v297_v24  ;;  %v295_v28 = vmul.f32 0.00390625, %v251_v27  ;;  %v248_v29 = vpop.xlane.xlu1 %247  ;;  %v342_v24 = vld [vmem:[%s2731_s2 + $0x140] sm:$0xff]  ;;  %v347_v27 = vld [vmem:[%s2731_s2 + $0x168] sm:$0xff] }
  0xc4   : > { %440 = vmatprep.subr.mxu0 %v1723_v20  ;;  %v294_v30 = vmul.f32 0.00390625, %v248_v29  ;;  %v349_v29 = vld [vmem:[%s2731_s2 + $0x178] sm:$0xff] }
  0xc5   : > { %441 = vmatpush2.msra.mxu0 %v296_v26  ;;  %v344_v26 = vld [vmem:[%s2731_s2 + $0x150] sm:$0xff] }
  0xc6   : > { %442 = vmatprep.subr.mxu0 %v1723_v20  ;;  %v245_v31 = vpop.xlane.xlu0 %244 }
  0xc7   : > { %443 = vmatpush2.msra.mxu0 %v295_v28  ;;  %v293_v32 = vmul.f32 0.00390625, %v245_v31  ;;  %v242_v33 = vpop.xlane.xlu1 %241  ;;  %v346_v28 = vld [vmem:[%s2731_s2 + $0x160] sm:$0xff]  ;;  %v351_v31 = vld [vmem:[%s2731_s2 + $0x188] sm:$0xff] }
  0xc8   : > { %444 = vmatprep.subr.mxu0 %v1723_v20  ;;  %v292_v34 = vmul.f32 0.00390625, %v242_v33  ;;  %v353_v33 = vld [vmem:[%s2731_s2 + $0x198] sm:$0xff] }
  0xc9   : > { %445 = vmatpush2.msra.mxu0 %v294_v30  ;;  %v348_v30 = vld [vmem:[%s2731_s2 + $0x170] sm:$0xff] }
  0xca   : > { %446 = vmatprep.subr.mxu0 %v1723_v20  ;;  %v239_v35 = vpop.xlane.xlu0 %238 }
  0xcb   : > { %447 = vmatpush2.msra.mxu0 %v293_v32  ;;  %v291_v36 = vmul.f32 0.00390625, %v239_v35  ;;  %v236_v37 = vpop.xlane.xlu1 %235  ;;  %v350_v32 = vld [vmem:[%s2731_s2 + $0x180] sm:$0xff]  ;;  %v355_v35 = vld [vmem:[%s2731_s2 + $0x1a8] sm:$0xff] }
  0xcc   : > { %448 = vmatprep.subr.mxu0 %v1723_v20  ;;  %v290_v38 = vmul.f32 0.00390625, %v236_v37  ;;  %v357_v37 = vld [vmem:[%s2731_s2 + $0x1b8] sm:$0xff] }
  0xcd   : > { %449 = vmatpush2.msra.mxu0 %v292_v34  ;;  %v352_v34 = vld [vmem:[%s2731_s2 + $0x190] sm:$0xff] }
  0xce   : > { %450 = vmatprep.subr.mxu0 %v1723_v20  ;;  %v233_v39 = vpop.xlane.xlu0 %232 }
  0xcf   : > { %451 = vmatpush2.msra.mxu0 %v291_v36  ;;  %v289_v40 = vmul.f32 0.00390625, %v233_v39  ;;  %v230_v41 = vpop.xlane.xlu1 %229  ;;  %v354_v36 = vld [vmem:[%s2731_s2 + $0x1a0] sm:$0xff]  ;;  %v359_v39 = vld [vmem:[%s2731_s2 + $0x1c8] sm:$0xff] }
  0xd0   : > { %452 = vmatprep.subr.mxu0 %v1723_v20  ;;  %v288_v42 = vmul.f32 0.00390625, %v230_v41  ;;  %v361_v41 = vld [vmem:[%s2731_s2 + $0x1d8] sm:$0xff] }
  0xd1   : > { %453 = vmatpush2.msra.mxu0 %v290_v38  ;;  %v356_v38 = vld [vmem:[%s2731_s2 + $0x1b0] sm:$0xff] }
  0xd2   : > { %454 = vmatprep.subr.mxu0 %v1723_v20  ;;  %v227_v43 = vpop.xlane.xlu0 %226 }
  0xd3   : > { %455 = vmatpush2.msra.mxu0 %v289_v40  ;;  %v287_v44 = vmul.f32 0.00390625, %v227_v43  ;;  %v224_v45 = vpop.xlane.xlu1 %223  ;;  %v358_v40 = vld [vmem:[%s2731_s2 + $0x1c0] sm:$0xff]  ;;  %v363_v43 = vld [vmem:[%s2731_s2 + $0x1e8] sm:$0xff] }
  0xd4   : > { %456 = vmatprep.subr.mxu0 %v1723_v20  ;;  %v286_v46 = vmul.f32 0.00390625, %v224_v45  ;;  %v365_v45 = vld [vmem:[%s2731_s2 + $0x1f8] sm:$0xff] }
  0xd5   : > { %457 = vmatpush2.msra.mxu0 %v288_v42  ;;  %v360_v42 = vld [vmem:[%s2731_s2 + $0x1d0] sm:$0xff] }
  0xd6   : > { %458 = vmatprep.subr.mxu0 %v1723_v20 }
  0xd7   : > { %459 = vmatpush2.msra.mxu0 %v287_v44  ;;  %v362_v44 = vld [vmem:[%s2731_s2 + $0x1e0] sm:$0xff] }
  0xd8   : > { %460 = vmatprep.subr.mxu0 %v1723_v20 }
  0xd9   : > { %461 = vmatpush2.msra.mxu0 %v286_v46  ;;  %v364_v46 = vld [vmem:[%s2731_s2 + $0x1f0] sm:$0xff] }
  0xda   : > { %463 = vmatmul.mubr.f32.vlgmr.msra.gmra.mxu0 %v302_v47 }
  0xdb   : > { %467 = vmatprep.mubr.f32.mxu0 %v305_v48 }
  0xde   : > { %468 = vmatmul.mubr.f32.gmra.mxu0 %v304_v49 }
  0xdf   : > { %472 = vmatprep.mubr.f32.mxu0 %v307_v10 }
  0xe2   : > { %473 = vmatmul.mubr.f32.gmra.mxu0 %v306_v11 }
  0xe3   : > { %477 = vmatprep.mubr.f32.mxu0 %v309_v50 }
  0xe6   : > { %478 = vmatmul.mubr.f32.gmra.mxu0 %v308_v51 }
  0xe7   : > { %482 = vmatprep.mubr.f32.mxu0 %v311_v52 }
  0xea   : > { %483 = vmatmul.mubr.f32.gmra.mxu0 %v310_v53 }
  0xeb   : > { %487 = vmatprep.mubr.f32.mxu0 %v313_v54 }
  0xee   : > { %488 = vmatmul.mubr.f32.gmra.mxu0 %v312_v55 }
  0xef   : > { %492 = vmatprep.mubr.f32.mxu0 %v315_v56 }
  0xf2   : > { %493 = vmatmul.mubr.f32.gmra.mxu0 %v314_v57 }
  0xf3   : > { %497 = vmatprep.mubr.f32.mxu0 %v317_v58 }
  0xf6   : > { %498 = vmatmul.mubr.f32.gmra.mxu0 %v316_v59 }
  0xf7   : > { %502 = vmatprep.mubr.f32.mxu0 %v319_v60 }
  0xfa   : > { %503 = vmatmul.mubr.f32.gmra.mxu0 %v318_v61  ;;  %v656_v61 = vld [vmem:[%s2733_s4 + $0x8] sm:$0xff] }
  0xfb   : > { %507 = vmatprep.mubr.f32.mxu0 %v321_v62  ;;  %815 = vmatprep.mubr.f32.mxu1 %v656_v61 }
  0xfe   : > { %508 = vmatmul.mubr.f32.gmra.mxu0 %v320_v63 }
  0xff   : > { %512 = vmatprep.mubr.f32.mxu0 %v323_v0 }
 0x102   : > { %513 = vmatmul.mubr.f32.gmra.mxu0 %v322_v1 }
 0x103   : > { %517 = vmatprep.mubr.f32.mxu0 %v325_v2 }
 0x106   : > { %518 = vmatmul.mubr.f32.gmra.mxu0 %v324_v3 }
 0x107   : > { %522 = vmatprep.mubr.f32.mxu0 %v327_v4 }
 0x10a   : > { %523 = vmatmul.mubr.f32.gmra.mxu0 %v326_v5 }
 0x10b   : > { %527 = vmatprep.mubr.f32.mxu0 %v329_v6 }
 0x10e   : > { %528 = vmatmul.mubr.f32.gmra.mxu0 %v328_v7 }
 0x10f   : > { %532 = vmatprep.mubr.f32.mxu0 %v331_v8 }
 0x112   : > { %533 = vmatmul.mubr.f32.gmra.mxu0 %v330_v9 }
 0x113   : > { %537 = vmatprep.mubr.f32.mxu0 %v333_v12 }
 0x116   : > { %538 = vmatmul.mubr.f32.gmra.mxu0 %v332_v13  ;;  %v380_v13 = vld [vmem:[%s2732_s3 + $0x70] sm:$0xff] }
 0x117   : > { %542 = vmatprep.mubr.f32.mxu0 %v335_v14 }
 0x11a   : > { %543 = vmatmul.mubr.f32.gmra.mxu0 %v334_v15  ;;  %v381_v15 = vld [vmem:[%s2732_s3 + $0x78] sm:$0xff] }
 0x11b   : > { %547 = vmatprep.mubr.f32.mxu0 %v337_v16  ;;  %v379_v16 = vld [vmem:[%s2732_s3 + $0x68] sm:$0xff] }
 0x11e   : > { %548 = vmatmul.mubr.f32.gmra.mxu0 %v336_v17 }
 0x11f   : > { %552 = vmatprep.mubr.f32.mxu0 %v339_v18 }
 0x122   : > { %553 = vmatmul.mubr.f32.gmra.mxu0 %v338_v19 }
 0x123   : > { %557 = vmatprep.mubr.f32.mxu0 %v341_v21  ;;  %v378_v21 = vld [vmem:[%s2732_s3 + $0x60] sm:$0xff] }
 0x126   : > { %558 = vmatmul.mubr.f32.gmra.mxu0 %v340_v22 }
 0x127   : > { %562 = vmatprep.mubr.f32.mxu0 %v343_v23 }
 0x12a   : > { %563 = vmatmul.mubr.f32.gmra.mxu0 %v342_v24 }
 0x12b   : > { %567 = vmatprep.mubr.f32.mxu0 %v345_v25  ;;  %v377_v25 = vld [vmem:[%s2732_s3 + $0x58] sm:$0xff] }
 0x12e   : > { %568 = vmatmul.mubr.f32.gmra.mxu0 %v344_v26 }
 0x12f   : > { %572 = vmatprep.mubr.f32.mxu0 %v347_v27 }
 0x132   : > { %573 = vmatmul.mubr.f32.gmra.mxu0 %v346_v28 }
 0x133   : > { %577 = vmatprep.mubr.f32.mxu0 %v349_v29  ;;  %v376_v29 = vld [vmem:[%s2732_s3 + $0x50] sm:$0xff] }
 0x136   : > { %578 = vmatmul.mubr.f32.gmra.mxu0 %v348_v30 }
 0x137   : > { %582 = vmatprep.mubr.f32.mxu0 %v351_v31 }
 0x13a   : > { %583 = vmatmul.mubr.f32.gmra.mxu0 %v350_v32 }
 0x13b   : > { %587 = vmatprep.mubr.f32.mxu0 %v353_v33  ;;  %v375_v33 = vld [vmem:[%s2732_s3 + $0x48] sm:$0xff] }
 0x13e   : > { %588 = vmatmul.mubr.f32.gmra.mxu0 %v352_v34 }
 0x13f   : > { %592 = vmatprep.mubr.f32.mxu0 %v355_v35 }
 0x142   : > { %593 = vmatmul.mubr.f32.gmra.mxu0 %v354_v36 }
 0x143   : > { %597 = vmatprep.mubr.f32.mxu0 %v357_v37  ;;  %v374_v37 = vld [vmem:[%s2732_s3 + $0x40] sm:$0xff] }
 0x146   : > { %598 = vmatmul.mubr.f32.gmra.mxu0 %v356_v38 }
 0x147   : > { %602 = vmatprep.mubr.f32.mxu0 %v359_v39 }
 0x14a   : > { %603 = vmatmul.mubr.f32.gmra.mxu0 %v358_v40 }
 0x14b   : > { %607 = vmatprep.mubr.f32.mxu0 %v361_v41  ;;  %v373_v41 = vld [vmem:[%s2732_s3 + $0x38] sm:$0xff] }
 0x14e   : > { %608 = vmatmul.mubr.f32.gmra.mxu0 %v360_v42 }
 0x14f   : > { %612 = vmatprep.mubr.f32.mxu0 %v363_v43 }
 0x152   : > { %613 = vmatmul.mubr.f32.gmra.mxu0 %v362_v44 }
 0x153   : > { %617 = vmatprep.mubr.f32.mxu0 %v365_v45  ;;  %v372_v45 = vld [vmem:[%s2732_s3 + $0x30] sm:$0xff] }
 0x156   : > { %618 = vmatmul.mubr.f32.gmra.mxu0 %v364_v46 }
 0x19a   : > { %v2134_v47 = vpop.f32.mrf.mxu0 }
 0x19c   : > { %v466_v48 = vpop.f32.mrf.mxu0 }
 0x19e   : > { %v2136_v49 = vpop.f32.mrf.mxu0 }
 0x1a0   : > { %v471_v10 = vpop.f32.mrf.mxu0 }
 0x1a2   : > { %v2138_v11 = vpop.f32.mrf.mxu0 }
 0x1a4   : > { %v476_v50 = vpop.f32.mrf.mxu0 }
 0x1a5   : > { %v371_v50 = vld [vmem:[%s2732_s3 + $0x28] sm:$0xff] }
 0x1a6   : > { %v2140_v51 = vpop.f32.mrf.mxu0 }
 0x1a8   : > { %v481_v52 = vpop.f32.mrf.mxu0 }
 0x1aa   : > { %v2142_v53 = vpop.f32.mrf.mxu0 }
 0x1ac   : > { %v486_v54 = vpop.f32.mrf.mxu0 }
 0x1ae   : > { %v2144_v55 = vpop.f32.mrf.mxu0 }
 0x1b0   : > { %v491_v56 = vpop.f32.mrf.mxu0 }
 0x1b2   : > { %v2146_v57 = vpop.f32.mrf.mxu0 }
 0x1b3   : > { %v495_v54 = vadd.f32 %v2146_v57, %v372_v45  ;;  %v393_v45 = vld [vmem:[%s2732_s3 + $0xd8] sm:$0xff] }
 0x1b4   : > { %v496_v58 = vpop.f32.mrf.mxu0 }
 0x1b5   : > { %v370_v58 = vld [vmem:[%s2732_s3 + $0x20] sm:$0xff] }
 0x1b6   : > { %v499_v59 = vpop.f32.mrf.mxu0  ;;  %v485_v57 = vadd.f32 %v2142_v53, %v370_v58 }
 0x1b7   : > { %v500_v48 = vadd.f32 %v499_v59, %v373_v41  ;;  %v490_v59 = vadd.f32 %v2144_v55, %v371_v50 }
 0x1b8   : > { %v501_v60 = vpop.f32.mrf.mxu0 }
 0x1b9   : > { %v630_v61 = vmax.f32 %v500_v48, 0.0 }
 0x1ba   : > { %v504_v62 = vpop.f32.mrf.mxu0 }
 0x1bb   : > { %v505_v43 = vadd.f32 %v504_v62, %v374_v37  ;;  %v369_v62 = vld [vmem:[%s2732_s3 + $0x18] sm:$0xff] }
 0x1bc   : > { %v506_v63 = vpop.f32.mrf.mxu0  ;;  %v480_v55 = vadd.f32 %v2140_v51, %v369_v62 }
 0x1bd   : > { %v631_v56 = vmax.f32 %v505_v43, 0.0 }
 0x1be   : > { %v509_v0 = vpop.f32.mrf.mxu0 }
 0x1bf   : > { %v510_v39 = vadd.f32 %v509_v0, %v375_v33  ;;  %v629_v0 = vmax.f32 %v495_v54, 0.0 }
 0x1c0   : > { %v511_v1 = vpop.f32.mrf.mxu0 }
 0x1c1   : > { %v632_v10 = vmax.f32 %v510_v39, 0.0  ;;  %v368_v1 = vld [vmem:[%s2732_s3 + $0x10] sm:$0xff] }
 0x1c2   : > { %v514_v2 = vpop.f32.mrf.mxu0  ;;  %v475_v53 = vadd.f32 %v2138_v11, %v368_v1 }
 0x1c3   : > { %v515_v35 = vadd.f32 %v514_v2, %v376_v29 }
 0x1c4   : > { %v516_v3 = vpop.f32.mrf.mxu0  ;;  %v625_v11 = vmax.f32 %v475_v53, 0.0 }
 0x1c5   : > { %v633_v44 = vmax.f32 %v515_v35, 0.0  ;;  %v628_v3 = vmax.f32 %v490_v59, 0.0  ;;  %v397_v35 = vld [vmem:[%s2732_s3 + $0xf8] sm:$0xff]  ;;  %v390_v59 = vld [vmem:[%s2732_s3 + $0xc0] sm:$0xff] }
 0x1c6   : > { %v519_v4 = vpop.f32.mrf.mxu0 }
 0x1c7   : > { %v520_v31 = vadd.f32 %v519_v4, %v377_v25  ;;  %v367_v4 = vld [vmem:[%s2732_s3 + $0x8] sm:$0xff] }
 0x1c8   : > { %v521_v5 = vpop.f32.mrf.mxu0  ;;  %v470_v51 = vadd.f32 %v2136_v49, %v367_v4  ;;  %v387_v4 = vld [vmem:[%s2732_s3 + $0xa8] sm:$0xff] }
 0x1c9   : > { %v634_v40 = vmax.f32 %v520_v31, 0.0 }
 0x1ca   : > { %v524_v6 = vpop.f32.mrf.mxu0 }
 0x1cb   : > { %v525_v27 = vadd.f32 %v524_v6, %v378_v21  ;;  %v627_v6 = vmax.f32 %v485_v57, 0.0  ;;  %v389_v57 = vld [vmem:[%s2732_s3 + $0xb8] sm:$0xff] }
 0x1cc   : > { %v526_v7 = vpop.f32.mrf.mxu0 }
 0x1cd   : > { %v635_v36 = vmax.f32 %v525_v27, 0.0  ;;  %v366_v7 = vld [vmem:[%s2732_s3] sm:$0xff] }
 0x1ce   : > { %v529_v8 = vpop.f32.mrf.mxu0 }
 0x1cf   : > { %v530_v23 = vadd.f32 %v529_v8, %v379_v16 }
 0x1d0   : > { %v531_v9 = vpop.f32.mrf.mxu0 }
 0x1d1   : > { %v636_v32 = vmax.f32 %v530_v23, 0.0  ;;  %v626_v9 = vmax.f32 %v480_v55, 0.0 }
 0x1d2   : > { %v534_v12 = vpop.f32.mrf.mxu0 }
 0x1d3   : > { %v535_v18 = vadd.f32 %v534_v12, %v380_v13  ;;  %v465_v13 = vadd.f32 %v2134_v47, %v366_v7  ;;  %v386_v7 = vld [vmem:[%s2732_s3 + $0xa0] sm:$0xff] }
 0x1d4   : > { %v536_v14 = vpop.f32.mrf.mxu0 }
 0x1d5   : > { %v637_v28 = vmax.f32 %v535_v18, 0.0 }
 0x1d6   : > { %v539_v17 = vpop.f32.mrf.mxu0 }
 0x1d7   : > { %v540_v19 = vadd.f32 %v539_v17, %v381_v15  ;;  %v624_v15 = vmax.f32 %v470_v51, 0.0  ;;  %v623_v17 = vmax.f32 %v465_v13, 0.0 }
 0x1d8   : > { %v541_v22 = vpop.f32.mrf.mxu0 }
 0x1d9   : > { %v638_v24 = vmax.f32 %v540_v19, 0.0 }
 0x1da   : > { %v2166_v26 = vpop.f32.mrf.mxu0 }
 0x1db   : > { %752 = vmatpush1.msra.mxu1 %v638_v24 }
 0x1dc   : > { %v546_v30 = vpop.f32.mrf.mxu0  ;;  %753 = vmatprep.subr.mxu1 %v1723_v20 }
 0x1dd   : > { %754 = vmatpush1.msra.mxu1 %v637_v28 }
 0x1de   : > { %v2175_v34 = vpop.f32.mrf.mxu0  ;;  %755 = vmatprep.subr.mxu1 %v1723_v20 }
 0x1df   : > { %756 = vmatpush1.msra.mxu1 %v636_v32  ;;  %v396_v32 = vld [vmem:[%s2732_s3 + $0xf0] sm:$0xff] }
 0x1e0   : > { %v551_v38 = vpop.f32.mrf.mxu0  ;;  %757 = vmatprep.subr.mxu1 %v1723_v20 }
 0x1e1   : > { %758 = vmatpush1.msra.mxu1 %v635_v36  ;;  %v395_v36 = vld [vmem:[%s2732_s3 + $0xe8] sm:$0xff] }
 0x1e2   : > { %v2185_v42 = vpop.f32.mrf.mxu0  ;;  %759 = vmatprep.subr.mxu1 %v1723_v20 }
 0x1e3   : > { %760 = vmatpush1.msra.mxu1 %v634_v40  ;;  %v394_v40 = vld [vmem:[%s2732_s3 + $0xe0] sm:$0xff] }
 0x1e4   : > { %v556_v46 = vpop.f32.mrf.mxu0  ;;  %761 = vmatprep.subr.mxu1 %v1723_v20 }
 0x1e5   : > { %762 = vmatpush1.msra.mxu1 %v633_v44 }
 0x1e6   : > { %v2195_v52 = vpop.f32.mrf.mxu0  ;;  %763 = vmatprep.subr.mxu1 %v1723_v20 }
 0x1e7   : > { %764 = vmatpush1.msra.mxu1 %v632_v10  ;;  %v392_v10 = vld [vmem:[%s2732_s3 + $0xd0] sm:$0xff] }
 0x1e8   : > { %v561_v60 = vpop.f32.mrf.mxu0  ;;  %765 = vmatprep.subr.mxu1 %v1723_v20 }
 0x1e9   : > { %766 = vmatpush1.msra.mxu1 %v631_v56  ;;  %v391_v56 = vld [vmem:[%s2732_s3 + $0xc8] sm:$0xff] }
 0x1ea   : > { %v2207_v63 = vpop.f32.mrf.mxu0  ;;  %767 = vmatprep.subr.mxu1 %v1723_v20 }
 0x1eb   : > { %768 = vmatpush1.msra.mxu1 %v630_v61 }
 0x1ec   : > { %v566_v2 = vpop.f32.mrf.mxu0  ;;  %769 = vmatprep.subr.mxu1 %v1723_v20 }
 0x1ed   : > { %770 = vmatpush1.msra.mxu1 %v629_v0  ;;  %v388_v2 = vld [vmem:[%s2732_s3 + $0xb0] sm:$0xff] }
 0x1ee   : > { %v2219_v5 = vpop.f32.mrf.mxu0  ;;  %771 = vmatprep.subr.mxu1 %v1723_v20 }
 0x1ef   : > { %772 = vmatpush1.msra.mxu1 %v628_v3 }
 0x1f0   : > { %v571_v8 = vpop.f32.mrf.mxu0  ;;  %773 = vmatprep.subr.mxu1 %v1723_v20 }
 0x1f1   : > { %774 = vmatpush1.msra.mxu1 %v627_v6  ;;  %v570_v8 = vadd.f32 %v2219_v5, %v387_v4  ;;  %v697_v4 = vld [vmem:[%s2733_s4 + $0x150] sm:$0xff] }
 0x1f2   : > { %v2228_v12 = vpop.f32.mrf.mxu0  ;;  %775 = vmatprep.subr.mxu1 %v1723_v20 }
 0x1f3   : > { %776 = vmatpush1.msra.mxu1 %v626_v9  ;;  %v575_v53 = vadd.f32 %v2228_v12, %v388_v2  ;;  %v385_v9 = vld [vmem:[%s2732_s3 + $0x98] sm:$0xff]  ;;  %v565_v12 = vadd.f32 %v2207_v63, %v386_v7  ;;  %v696_v2 = vld [vmem:[%s2733_s4 + $0x148] sm:$0xff] }
 0x1f4   : > { %v576_v14 = vpop.f32.mrf.mxu0  ;;  %777 = vmatprep.subr.mxu1 %v1723_v20  ;;  %v560_v5 = vadd.f32 %v2195_v52, %v385_v9  ;;  %v702_v7 = vld [vmem:[%s2733_s4 + $0x178] sm:$0xff]  ;;  %v703_v9 = vld [vmem:[%s2733_s4 + $0x180] sm:$0xff] }
 0x1f5   : > { %778 = vmatpush1.msra.mxu1 %v625_v11  ;;  %v645_v13 = vmax.f32 %v575_v53, 0.0  ;;  %v384_v11 = vld [vmem:[%s2732_s3 + $0x90] sm:$0xff]  ;;  %v644_v14 = vmax.f32 %v570_v8, 0.0  ;;  %v700_v53 = vld [vmem:[%s2733_s4 + $0x168] sm:$0xff] }
 0x1f6   : > { %v579_v16 = vpop.f32.mrf.mxu0  ;;  %779 = vmatprep.subr.mxu1 %v1723_v20  ;;  %v555_v63 = vadd.f32 %v2185_v42, %v384_v11  ;;  %v701_v8 = vld [vmem:[%s2733_s4 + $0x170] sm:$0xff]  ;;  %v708_v11 = vld [vmem:[%s2733_s4 + $0x1a8] sm:$0xff] }
 0x1f7   : > { %780 = vmatpush1.msra.mxu1 %v624_v15  ;;  %v580_v55 = vadd.f32 %v579_v16, %v389_v57  ;;  %v383_v15 = vld [vmem:[%s2732_s3 + $0x88] sm:$0xff]  ;;  %v643_v16 = vmax.f32 %v565_v12, 0.0  ;;  %v691_v57 = vld [vmem:[%s2733_s4 + $0x120] sm:$0xff]  ;;  %v706_v12 = vld [vmem:[%s2733_s4 + $0x198] sm:$0xff] }
 0x1f8   : > { %v581_v49 = vpop.f32.mrf.mxu0  ;;  %781 = vmatprep.subr.mxu1 %v1723_v20  ;;  %v550_v52 = vadd.f32 %v2175_v34, %v383_v15  ;;  %v655_v34 = vld [vmem:[%s2733_s4] sm:$0xff]  ;;  %v710_v15 = vld [vmem:[%s2733_s4 + $0x1b8] sm:$0xff] }
 0x1f9   : > { %782 = vmatpush1.msra.mxu1 %v623_v17  ;;  %v646_v51 = vmax.f32 %v580_v55, 0.0  ;;  %v382_v17 = vld [vmem:[%s2732_s3 + $0x80] sm:$0xff]  ;;  %v642_v49 = vmax.f32 %v560_v5, 0.0  ;;  %v1724_v5 = vmov 0  }
 0x1fa   : > { %v584_v18 = vpop.f32.mrf.mxu0  ;;  %783 = vmatprep.subr.mxu1 %v1723_v20  ;;  %v640_v42 = vmax.f32 %v550_v52, 0.0  ;;  %v695_v55 = vld [vmem:[%s2733_s4 + $0x140] sm:$0xff]  ;;  %1521 = vset.pattern.permute.xlu0 %v1724_v5  ;;  %v714_v52 = vld [vmem:[%s2733_s4 + $0x1d8] sm:$0xff] }
 0x1fb   : > { %v585_v0 = vadd.f32 %v584_v18, %v390_v59  ;;  %v545_v18 = vadd.f32 %v2166_v26, %v382_v17  ;;  %v658_v26 = vld [vmem:[%s2733_s4 + $0x18] sm:$0xff]  ;;  %1522 = vset.pattern.permute.xlu1 %v1724_v5  ;;  %v711_v17 = vld [vmem:[%s2733_s4 + $0x1c0] sm:$0xff] }
 0x1fc   : > { %v586_v47 = vpop.f32.mrf.mxu0  ;;  %v690_v59 = vld [vmem:[%s2733_s4 + $0x118] sm:$0xff] }
 0x1fd   : > { %v647_v6 = vmax.f32 %v585_v0, 0.0  ;;  %v641_v47 = vmax.f32 %v555_v63, 0.0  ;;  %v694_v0 = vld [vmem:[%s2733_s4 + $0x138] sm:$0xff]  ;;  %v709_v63 = vld [vmem:[%s2733_s4 + $0x1b0] sm:$0xff] }
 0x1fe   : > { %v589_v19 = vpop.f32.mrf.mxu0 }
 0x1ff   : > { %v590_v61 = vadd.f32 %v589_v19, %v391_v56  ;;  %v639_v19 = vmax.f32 %v545_v18, 0.0  ;;  %v685_v56 = vld [vmem:[%s2733_s4 + $0xf0] sm:$0xff]  ;;  %v716_v18 = vld [vmem:[%s2733_s4 + $0x1e8] sm:$0xff] }
 0x200   : > { %v591_v21 = vpop.f32.mrf.mxu0 }
 0x201   : > { %v648_v3 = vmax.f32 %v590_v61, 0.0  ;;  %v657_v21 = vld [vmem:[%s2733_s4 + $0x10] sm:$0xff] }
 0x202   : > { %v594_v22 = vpop.f32.mrf.mxu0  ;;  %v689_v61 = vld [vmem:[%s2733_s4 + $0x110] sm:$0xff] }
 0x203   : > { %v595_v58 = vadd.f32 %v594_v22, %v392_v10  ;;  %v660_v22 = vld [vmem:[%s2733_s4 + $0x28] sm:$0xff] }
 0x204   : > { %v596_v23 = vpop.f32.mrf.mxu0  ;;  %v684_v10 = vld [vmem:[%s2733_s4 + $0xe8] sm:$0xff] }
 0x205   : > { %v649_v1 = vmax.f32 %v595_v58, 0.0  ;;  %v662_v23 = vld [vmem:[%s2733_s4 + $0x38] sm:$0xff]  ;;  %v688_v58 = vld [vmem:[%s2733_s4 + $0x108] sm:$0xff] }
 0x206   : > { %v599_v24 = vpop.f32.mrf.mxu0 }
 0x207   : > { %v600_v50 = vadd.f32 %v599_v24, %v393_v45  ;;  %v661_v24 = vld [vmem:[%s2733_s4 + $0x30] sm:$0xff]  ;;  %v679_v45 = vld [vmem:[%s2733_s4 + $0xc0] sm:$0xff] }
 0x208   : > { %v601_v25 = vpop.f32.mrf.mxu0 }
 0x209   : > { %v650_v62 = vmax.f32 %v600_v50, 0.0  ;;  %v664_v25 = vld [vmem:[%s2733_s4 + $0x48] sm:$0xff]  ;;  %v683_v50 = vld [vmem:[%s2733_s4 + $0xe0] sm:$0xff] }
 0x20a   : > { %v604_v27 = vpop.f32.mrf.mxu0 }
 0x20b   : > { %v605_v46 = vadd.f32 %v604_v27, %v394_v40  ;;  %v663_v27 = vld [vmem:[%s2733_s4 + $0x40] sm:$0xff] }
 0x20c   : > { %v606_v28 = vpop.f32.mrf.mxu0  ;;  %v675_v40 = vld [vmem:[%s2733_s4 + $0xa0] sm:$0xff] }
 0x20d   : > { %v651_v60 = vmax.f32 %v605_v46, 0.0  ;;  %v666_v28 = vld [vmem:[%s2733_s4 + $0x58] sm:$0xff] }
 0x20e   : > { %v609_v29 = vpop.f32.mrf.mxu0  ;;  %v682_v46 = vld [vmem:[%s2733_s4 + $0xd8] sm:$0xff] }
 0x20f   : > { %v610_v43 = vadd.f32 %v609_v29, %v395_v36  ;;  %v665_v29 = vld [vmem:[%s2733_s4 + $0x50] sm:$0xff]  ;;  %v671_v36 = vld [vmem:[%s2733_s4 + $0x80] sm:$0xff] }
 0x210   : > { %v611_v30 = vpop.f32.mrf.mxu0 }
 0x211   : > { %v652_v54 = vmax.f32 %v610_v43, 0.0  ;;  %v668_v30 = vld [vmem:[%s2733_s4 + $0x68] sm:$0xff]  ;;  %v677_v43 = vld [vmem:[%s2733_s4 + $0xb0] sm:$0xff] }
 0x212   : > { %v614_v31 = vpop.f32.mrf.mxu0 }
 0x213   : > { %v615_v38 = vadd.f32 %v614_v31, %v396_v32  ;;  %v667_v31 = vld [vmem:[%s2733_s4 + $0x60] sm:$0xff]  ;;  %v670_v32 = vld [vmem:[%s2733_s4 + $0x78] sm:$0xff] }
 0x214   : > { %v616_v33 = vpop.f32.mrf.mxu0 }
 0x215   : > { %v653_v48 = vmax.f32 %v615_v38, 0.0  ;;  %v669_v33 = vld [vmem:[%s2733_s4 + $0x70] sm:$0xff] }
 0x216   : > { %v619_v37 = vpop.f32.mrf.mxu0  ;;  %v673_v38 = vld [vmem:[%s2733_s4 + $0x90] sm:$0xff] }
 0x217   : > { %v620_v39 = vadd.f32 %v619_v37, %v397_v35  ;;  %v672_v35 = vld [vmem:[%s2733_s4 + $0x88] sm:$0xff]  ;;  %v674_v37 = vld [vmem:[%s2733_s4 + $0x98] sm:$0xff] }
 0x218   : > { %v621_v41 = vpop.f32.mrf.mxu0 }
 0x219   : > { %v654_v44 = vmax.f32 %v620_v39, 0.0  ;;  %v676_v39 = vld [vmem:[%s2733_s4 + $0xa8] sm:$0xff]  ;;  %v678_v41 = vld [vmem:[%s2733_s4 + $0xb8] sm:$0xff] }
 0x21b   : > { %784 = vmatpush2.msra.mxu1 %v654_v44  ;;  %v680_v44 = vld [vmem:[%s2733_s4 + $0xc8] sm:$0xff] }
 0x21c   : > { %785 = vmatprep.subr.mxu1 %v1723_v20 }
 0x21d   : > { %786 = vmatpush2.msra.mxu1 %v653_v48  ;;  %v681_v48 = vld [vmem:[%s2733_s4 + $0xd0] sm:$0xff] }
 0x21e   : > { %787 = vmatprep.subr.mxu1 %v1723_v20 }
 0x21f   : > { %788 = vmatpush2.msra.mxu1 %v652_v54  ;;  %v686_v54 = vld [vmem:[%s2733_s4 + $0xf8] sm:$0xff] }
 0x220   : > { %789 = vmatprep.subr.mxu1 %v1723_v20 }
 0x221   : > { %790 = vmatpush2.msra.mxu1 %v651_v60  ;;  %v687_v60 = vld [vmem:[%s2733_s4 + $0x100] sm:$0xff] }
 0x222   : > { %791 = vmatprep.subr.mxu1 %v1723_v20 }
 0x223   : > { %792 = vmatpush2.msra.mxu1 %v650_v62  ;;  %v692_v62 = vld [vmem:[%s2733_s4 + $0x128] sm:$0xff] }
 0x224   : > { %793 = vmatprep.subr.mxu1 %v1723_v20 }
 0x225   : > { %794 = vmatpush2.msra.mxu1 %v649_v1  ;;  %v693_v1 = vld [vmem:[%s2733_s4 + $0x130] sm:$0xff] }
 0x226   : > { %795 = vmatprep.subr.mxu1 %v1723_v20 }
 0x227   : > { %796 = vmatpush2.msra.mxu1 %v648_v3  ;;  %v698_v3 = vld [vmem:[%s2733_s4 + $0x158] sm:$0xff] }
 0x228   : > { %797 = vmatprep.subr.mxu1 %v1723_v20 }
 0x229   : > { %798 = vmatpush2.msra.mxu1 %v647_v6  ;;  %v699_v6 = vld [vmem:[%s2733_s4 + $0x160] sm:$0xff] }
 0x22a   : > { %799 = vmatprep.subr.mxu1 %v1723_v20 }
 0x22b   : > { %800 = vmatpush2.msra.mxu1 %v646_v51  ;;  %v704_v51 = vld [vmem:[%s2733_s4 + $0x188] sm:$0xff] }
 0x22c   : > { %801 = vmatprep.subr.mxu1 %v1723_v20 }
 0x22d   : > { %802 = vmatpush2.msra.mxu1 %v645_v13  ;;  %v705_v13 = vld [vmem:[%s2733_s4 + $0x190] sm:$0xff] }
 0x22e   : > { %803 = vmatprep.subr.mxu1 %v1723_v20 }
 0x22f   : > { %804 = vmatpush2.msra.mxu1 %v644_v14  ;;  %v707_v14 = vld [vmem:[%s2733_s4 + $0x1a0] sm:$0xff] }
 0x230   : > { %805 = vmatprep.subr.mxu1 %v1723_v20 }
 0x231   : > { %806 = vmatpush2.msra.mxu1 %v643_v16  ;;  %v712_v16 = vld [vmem:[%s2733_s4 + $0x1c8] sm:$0xff] }
 0x232   : > { %807 = vmatprep.subr.mxu1 %v1723_v20 }
 0x233   : > { %808 = vmatpush2.msra.mxu1 %v642_v49  ;;  %v713_v49 = vld [vmem:[%s2733_s4 + $0x1d0] sm:$0xff] }
 0x234   : > { %809 = vmatprep.subr.mxu1 %v1723_v20 }
 0x235   : > { %810 = vmatpush2.msra.mxu1 %v641_v47  ;;  %v715_v47 = vld [vmem:[%s2733_s4 + $0x1e0] sm:$0xff] }
 0x236   : > { %811 = vmatprep.subr.mxu1 %v1723_v20 }
 0x237   : > { %812 = vmatpush2.msra.mxu1 %v640_v42  ;;  %v718_v42 = vld [vmem:[%s2733_s4 + $0x1f8] sm:$0xff] }
 0x238   : > { %813 = vmatprep.subr.mxu1 %v1723_v20  ;;  %v659_v20 = vld [vmem:[%s2733_s4 + $0x20] sm:$0xff] }
 0x239   : > { %814 = vmatpush2.msra.mxu1 %v639_v19  ;;  %v717_v19 = vld [vmem:[%s2733_s4 + $0x1f0] sm:$0xff] }
 0x23a   : > { %816 = vmatmul.mubr.f32.vlgmr.msra.gmra.mxu1 %v655_v34  ;;  %v719_v34 = vld [vmem:[%s2734_s5] sm:$0xff] }
 0x23b   : > { %820 = vmatprep.mubr.f32.mxu1 %v658_v26 }
 0x23e   : > { %821 = vmatmul.mubr.f32.gmra.mxu1 %v657_v21 }
 0x23f   : > { %825 = vmatprep.mubr.f32.mxu1 %v660_v22 }
 0x242   : > { %826 = vmatmul.mubr.f32.gmra.mxu1 %v659_v20  ;;  %v720_v20 = vld [vmem:[%s2734_s5 + $0x8] sm:$0xff] }
 0x243   : > { %830 = vmatprep.mubr.f32.mxu1 %v662_v23 }
 0x246   : > { %831 = vmatmul.mubr.f32.gmra.mxu1 %v661_v24 }
 0x247   : > { %835 = vmatprep.mubr.f32.mxu1 %v664_v25 }
 0x24a   : > { %836 = vmatmul.mubr.f32.gmra.mxu1 %v663_v27 }
 0x24b   : > { %840 = vmatprep.mubr.f32.mxu1 %v666_v28  ;;  %v721_v28 = vld [vmem:[%s2734_s5 + $0x10] sm:$0xff] }
 0x24e   : > { %841 = vmatmul.mubr.f32.gmra.mxu1 %v665_v29 }
 0x24f   : > { %845 = vmatprep.mubr.f32.mxu1 %v668_v30 }
 0x252   : > { %846 = vmatmul.mubr.f32.gmra.mxu1 %v667_v31 }
 0x253   : > { %850 = vmatprep.mubr.f32.mxu1 %v670_v32 }
 0x256   : > { %851 = vmatmul.mubr.f32.gmra.mxu1 %v669_v33  ;;  %v722_v33 = vld [vmem:[%s2734_s5 + $0x18] sm:$0xff] }
 0x257   : > { %855 = vmatprep.mubr.f32.mxu1 %v672_v35 }
 0x25a   : > { %856 = vmatmul.mubr.f32.gmra.mxu1 %v671_v36 }
 0x25b   : > { %860 = vmatprep.mubr.f32.mxu1 %v674_v37 }
 0x25e   : > { %861 = vmatmul.mubr.f32.gmra.mxu1 %v673_v38 }
 0x25f   : > { %865 = vmatprep.mubr.f32.mxu1 %v676_v39  ;;  %v723_v39 = vld [vmem:[%s2734_s5 + $0x20] sm:$0xff] }
 0x262   : > { %866 = vmatmul.mubr.f32.gmra.mxu1 %v675_v40 }
 0x263   : > { %870 = vmatprep.mubr.f32.mxu1 %v678_v41 }
 0x266   : > { %871 = vmatmul.mubr.f32.gmra.mxu1 %v677_v43 }
 0x267   : > { %875 = vmatprep.mubr.f32.mxu1 %v680_v44 }
 0x26a   : > { %876 = vmatmul.mubr.f32.gmra.mxu1 %v679_v45 }
 0x26b   : > { %880 = vmatprep.mubr.f32.mxu1 %v682_v46  ;;  %v724_v46 = vld [vmem:[%s2734_s5 + $0x28] sm:$0xff] }
 0x26e   : > { %881 = vmatmul.mubr.f32.gmra.mxu1 %v681_v48 }
 0x26f   : > { %885 = vmatprep.mubr.f32.mxu1 %v684_v10 }
 0x272   : > { %886 = vmatmul.mubr.f32.gmra.mxu1 %v683_v50 }
 0x273   : > { %890 = vmatprep.mubr.f32.mxu1 %v686_v54 }
 0x276   : > { %891 = vmatmul.mubr.f32.gmra.mxu1 %v685_v56 }
 0x277   : > { %895 = vmatprep.mubr.f32.mxu1 %v688_v58 }
 0x27a   : > { %896 = vmatmul.mubr.f32.gmra.mxu1 %v687_v60  ;;  %v725_v60 = vld [vmem:[%s2734_s5 + $0x30] sm:$0xff] }
 0x27b   : > { %900 = vmatprep.mubr.f32.mxu1 %v690_v59 }
 0x27e   : > { %901 = vmatmul.mubr.f32.gmra.mxu1 %v689_v61 }
 0x27f   : > { %905 = vmatprep.mubr.f32.mxu1 %v692_v62 }
 0x282   : > { %906 = vmatmul.mubr.f32.gmra.mxu1 %v691_v57 }
 0x283   : > { %910 = vmatprep.mubr.f32.mxu1 %v694_v0 }
 0x286   : > { %911 = vmatmul.mubr.f32.gmra.mxu1 %v693_v1 }
 0x287   : > { %915 = vmatprep.mubr.f32.mxu1 %v696_v2  ;;  %v726_v2 = vld [vmem:[%s2734_s5 + $0x38] sm:$0xff] }
 0x28a   : > { %916 = vmatmul.mubr.f32.gmra.mxu1 %v695_v55 }
 0x28b   : > { %920 = vmatprep.mubr.f32.mxu1 %v698_v3 }
 0x28e   : > { %921 = vmatmul.mubr.f32.gmra.mxu1 %v697_v4 }
 0x28f   : > { %925 = vmatprep.mubr.f32.mxu1 %v700_v53 }
 0x292   : > { %926 = vmatmul.mubr.f32.gmra.mxu1 %v699_v6 }
 0x293   : > { %930 = vmatprep.mubr.f32.mxu1 %v702_v7 }
 0x296   : > { %931 = vmatmul.mubr.f32.gmra.mxu1 %v701_v8  ;;  %v727_v8 = vld [vmem:[%s2734_s5 + $0x40] sm:$0xff] }
 0x297   : > { %935 = vmatprep.mubr.f32.mxu1 %v704_v51 }
 0x29a   : > { %936 = vmatmul.mubr.f32.gmra.mxu1 %v703_v9 }
 0x29b   : > { %940 = vmatprep.mubr.f32.mxu1 %v706_v12 }
 0x29e   : > { %941 = vmatmul.mubr.f32.gmra.mxu1 %v705_v13 }
 0x29f   : > { %945 = vmatprep.mubr.f32.mxu1 %v708_v11 }
 0x2a2   : > { %946 = vmatmul.mubr.f32.gmra.mxu1 %v707_v14  ;;  %v728_v14 = vld [vmem:[%s2734_s5 + $0x48] sm:$0xff] }
 0x2a3   : > { %950 = vmatprep.mubr.f32.mxu1 %v710_v15 }
 0x2a6   : > { %951 = vmatmul.mubr.f32.gmra.mxu1 %v709_v63 }
 0x2a7   : > { %955 = vmatprep.mubr.f32.mxu1 %v712_v16 }
 0x2aa   : > { %956 = vmatmul.mubr.f32.gmra.mxu1 %v711_v17 }
 0x2ab   : > { %960 = vmatprep.mubr.f32.mxu1 %v714_v52 }
 0x2ae   : > { %961 = vmatmul.mubr.f32.gmra.mxu1 %v713_v49 }
 0x2af   : > { %965 = vmatprep.mubr.f32.mxu1 %v716_v18 }
 0x2b2   : > { %966 = vmatmul.mubr.f32.gmra.mxu1 %v715_v47  ;;  %v729_v47 = vld [vmem:[%s2734_s5 + $0x50] sm:$0xff] }
 0x2b3   : > { %970 = vmatprep.mubr.f32.mxu1 %v718_v42 }
 0x2b6   : > { %971 = vmatmul.mubr.f32.gmra.mxu1 %v717_v19 }
 0x2fa   : > { %v817_v26 = vpop.f32.mrf.mxu1 }
 0x2fb   : > { %v818_v21 = vadd.f32 %v817_v26, %v719_v34 }
 0x2fc   : > { %v819_v22 = vpop.f32.mrf.mxu1 }
 0x2fd   : > { %v1476_v23 = vmul.f32 -1.442695, %v818_v21 }
 0x2fe   : > { %v822_v24 = vpop.f32.mrf.mxu1 }
 0x2ff   : > { %1523 = vpow2.f32 %v1476_v23  ;;  %v823_v25 = vadd.f32 %v822_v24, %v720_v20  ;;  %v730_v23 = vld [vmem:[%s2734_s5 + $0x58] sm:$0xff] }
 0x300   : > { %v824_v27 = vpop.f32.mrf.mxu1 }
 0x301   : > { %v1477_v29 = vmul.f32 -1.442695, %v823_v25 }
 0x302   : > { %v827_v30 = vpop.f32.mrf.mxu1 }
 0x303   : > { %1525 = vpow2.f32 %v1477_v29  ;;  %v828_v31 = vadd.f32 %v827_v30, %v721_v28 }
 0x304   : > { %v829_v32 = vpop.f32.mrf.mxu1 }
 0x305   : > { %v1478_v35 = vmul.f32 -1.442695, %v828_v31  ;;  %v731_v32 = vld [vmem:[%s2734_s5 + $0x60] sm:$0xff] }
 0x306   : > { %v832_v36 = vpop.f32.mrf.mxu1 }
 0x307   : > { %1527 = vpow2.f32 %v1478_v35  ;;  %v833_v37 = vadd.f32 %v832_v36, %v722_v33 }
 0x308   : > { %v834_v38 = vpop.f32.mrf.mxu1 }
 0x309   : > { %v1479_v40 = vmul.f32 -1.442695, %v833_v37 }
 0x30a   : > { %v837_v41 = vpop.f32.mrf.mxu1 }
 0x30b   : > { %1529 = vpow2.f32 %v1479_v40  ;;  %v838_v43 = vadd.f32 %v837_v41, %v723_v39  ;;  %v732_v41 = vld [vmem:[%s2734_s5 + $0x68] sm:$0xff] }
 0x30c   : > { %v1524_v44 = vpop.eup %1523  ;;  %v839_v45 = vpop.f32.mrf.mxu1 }
 0x30d   : > { %v1072_v48 = vadd.f32 1.0, %v1524_v44  ;;  %v1480_v10 = vmul.f32 -1.442695, %v838_v43 }
 0x30e   : > { %v842_v50 = vpop.f32.mrf.mxu1 }
 0x30f   : > { %1531 = vrcp.f32 %v1072_v48  ;;  %v843_v54 = vadd.f32 %v842_v50, %v724_v46 }
 0x310   : > { %v1526_v56 = vpop.eup %1525  ;;  %1533 = vpow2.f32 %v1480_v10  ;;  %v844_v58 = vpop.f32.mrf.mxu1 }
 0x311   : > { %v1073_v59 = vadd.f32 1.0, %v1526_v56  ;;  %v1481_v61 = vmul.f32 -1.442695, %v843_v54  ;;  %v733_v54 = vld [vmem:[%s2734_s5 + $0x70] sm:$0xff] }
 0x312   : > { %v847_v62 = vpop.f32.mrf.mxu1 }
 0x313   : > { %1535 = vrcp.f32 %v1073_v59  ;;  %v848_v57 = vadd.f32 %v847_v62, %v725_v60 }
 0x314   : > { %v1528_v0 = vpop.eup %1527  ;;  %1537 = vpow2.f32 %v1481_v61  ;;  %v849_v1 = vpop.f32.mrf.mxu1 }
 0x315   : > { %v1074_v55 = vadd.f32 1.0, %v1528_v0  ;;  %v1482_v3 = vmul.f32 -1.442695, %v848_v57  ;;  %v734_v0 = vld [vmem:[%s2734_s5 + $0x78] sm:$0xff] }
 0x316   : > { %v852_v4 = vpop.f32.mrf.mxu1 }
 0x317   : > { %1539 = vrcp.f32 %v1074_v55  ;;  %v853_v53 = vadd.f32 %v852_v4, %v726_v2 }
 0x318   : > { %v1530_v6 = vpop.eup %1529  ;;  %1541 = vpow2.f32 %v1482_v3  ;;  %v854_v7 = vpop.f32.mrf.mxu1 }
 0x319   : > { %v1075_v51 = vadd.f32 1.0, %v1530_v6  ;;  %v1483_v9 = vmul.f32 -1.442695, %v853_v53  ;;  %v735_v7 = vld [vmem:[%s2734_s5 + $0x80] sm:$0xff] }
 0x31a   : > { %v857_v12 = vpop.f32.mrf.mxu1 }
 0x31b   : > { %1543 = vrcp.f32 %v1075_v51  ;;  %v858_v13 = vadd.f32 %v857_v12, %v727_v8 }
 0x31c   : > { %v1532_v11 = vpop.eup %1531  ;;  %1545 = vpow2.f32 %v1483_v9  ;;  %v859_v5 = vpop.f32.mrf.mxu1 }
 0x31d   : > { %v1534_v15 = vpop.eup %1533  ;;  %v1484_v63 = vmul.f32 -1.442695, %v858_v13  ;;  %1170 = vperm.xlu0 %1521, %v1532_v11  }
 0x31e   : > { %v1076_v16 = vadd.f32 1.0, %v1534_v15  ;;  %v862_v17 = vpop.f32.mrf.mxu1 }
 0x31f   : > { %1547 = vpow2.f32 %v1484_v63  ;;  %v863_v52 = vadd.f32 %v862_v17, %v728_v14  ;;  %v736_v14 = vld [vmem:[%s2734_s5 + $0x88] sm:$0xff] }
 0x320   : > { %v1536_v49 = vpop.eup %1535  ;;  %1549 = vrcp.f32 %v1076_v16  ;;  %v864_v18 = vpop.f32.mrf.mxu1 }
 0x321   : > { %v1538_v42 = vpop.eup %1537  ;;  %v1485_v19 = vmul.f32 -1.442695, %v863_v52  ;;  %1175 = vperm.xlu1 %1522, %v1536_v49  }
 0x322   : > { %v1077_v34 = vadd.f32 1.0, %v1538_v42  ;;  %v867_v26 = vpop.f32.mrf.mxu1 }
 0x323   : > { %1551 = vpow2.f32 %v1485_v19  ;;  %v868_v21 = vadd.f32 %v867_v26, %v729_v47  ;;  %v737_v47 = vld [vmem:[%s2734_s5 + $0x90] sm:$0xff] }
 0x324   : > { %v1540_v22 = vpop.eup %1539  ;;  %1553 = vrcp.f32 %v1077_v34  ;;  %v869_v20 = vpop.f32.mrf.mxu1 }
 0x325   : > { %v1542_v24 = vpop.eup %1541  ;;  %v1486_v25 = vmul.f32 -1.442695, %v868_v21  ;;  %1180 = vperm.xlu1 %1522, %v1540_v22  }
 0x326   : > { %v1078_v27 = vadd.f32 1.0, %v1542_v24  ;;  %v872_v28 = vpop.f32.mrf.mxu1 }
 0x327   : > { %1555 = vpow2.f32 %v1486_v25  ;;  %v873_v29 = vadd.f32 %v872_v28, %v730_v23  ;;  %v738_v23 = vld [vmem:[%s2734_s5 + $0x98] sm:$0xff] }
 0x328   : > { %v1544_v30 = vpop.eup %1543  ;;  %1557 = vrcp.f32 %v1078_v27  ;;  %v874_v31 = vpop.f32.mrf.mxu1 }
 0x329   : > { %v1546_v33 = vpop.eup %1545  ;;  %v1487_v35 = vmul.f32 -1.442695, %v873_v29  ;;  %1185 = vperm.xlu1 %1522, %v1544_v30  }
 0x32a   : > { %v1079_v36 = vadd.f32 1.0, %v1546_v33  ;;  %v877_v37 = vpop.f32.mrf.mxu1 }
 0x32b   : > { %1559 = vpow2.f32 %v1487_v35  ;;  %v878_v38 = vadd.f32 %v877_v37, %v731_v32  ;;  %v739_v32 = vld [vmem:[%s2734_s5 + $0xa0] sm:$0xff] }
 0x32c   : > { %v1548_v39 = vpop.eup %1547  ;;  %1561 = vrcp.f32 %v1079_v36  ;;  %v879_v40 = vpop.f32.mrf.mxu1 }
 0x32d   : > { %v1550_v43 = vpop.eup %1549  ;;  %v1080_v44 = vadd.f32 1.0, %v1548_v39  ;;  %v1488_v45 = vmul.f32 -1.442695, %v878_v38 }
 0x32e   : > { %1190 = vperm.xlu1 %1522, %v1550_v43   ;;  %v882_v46 = vpop.f32.mrf.mxu1 }
 0x32f   : > { %1563 = vrcp.f32 %v1080_v44  ;;  %v883_v48 = vadd.f32 %v882_v46, %v732_v41  ;;  %v740_v41 = vld [vmem:[%s2734_s5 + $0xa8] sm:$0xff] }
 0x330   : > { %v1552_v10 = vpop.eup %1551  ;;  %1565 = vpow2.f32 %v1488_v45  ;;  %v884_v50 = vpop.f32.mrf.mxu1 }
 0x331   : > { %v1554_v56 = vpop.eup %1553  ;;  %v1081_v58 = vadd.f32 1.0, %v1552_v10  ;;  %v1489_v60 = vmul.f32 -1.442695, %v883_v48 }
 0x332   : > { %1195 = vperm.xlu1 %1522, %v1554_v56   ;;  %v887_v59 = vpop.f32.mrf.mxu1 }
 0x333   : > { %1567 = vrcp.f32 %v1081_v58  ;;  %v888_v61 = vadd.f32 %v887_v59, %v733_v54  ;;  %v741_v54 = vld [vmem:[%s2734_s5 + $0xb0] sm:$0xff] }
 0x334   : > { %v1556_v62 = vpop.eup %1555  ;;  %1569 = vpow2.f32 %v1489_v60  ;;  %v889_v57 = vpop.f32.mrf.mxu1 }
 0x335   : > { %v1558_v1 = vpop.eup %1557  ;;  %v1082_v2 = vadd.f32 1.0, %v1556_v62  ;;  %v1490_v55 = vmul.f32 -1.442695, %v888_v61 }
 0x336   : > { %1200 = vperm.xlu1 %1522, %v1558_v1   ;;  %v892_v3 = vpop.f32.mrf.mxu1 }
 0x337   : > { %1571 = vrcp.f32 %v1082_v2  ;;  %v893_v4 = vadd.f32 %v892_v3, %v734_v0  ;;  %v742_v0 = vld [vmem:[%s2734_s5 + $0xb8] sm:$0xff] }
 0x338   : > { %v1560_v53 = vpop.eup %1559  ;;  %1573 = vpow2.f32 %v1490_v55  ;;  %v894_v6 = vpop.f32.mrf.mxu1 }
 0x339   : > { %v1562_v8 = vpop.eup %1561  ;;  %v1083_v51 = vadd.f32 1.0, %v1560_v53  ;;  %v1491_v9 = vmul.f32 -1.442695, %v893_v4 }
 0x33a   : > { %1205 = vperm.xlu1 %1522, %v1562_v8   ;;  %v897_v12 = vpop.f32.mrf.mxu1 }
 0x33b   : > { %1575 = vrcp.f32 %v1083_v51  ;;  %v898_v13 = vadd.f32 %v897_v12, %v735_v7  ;;  %v743_v7 = vld [vmem:[%s2734_s5 + $0xc0] sm:$0xff] }
 0x33c   : > { %v1564_v11 = vpop.eup %1563  ;;  %1577 = vpow2.f32 %v1491_v9  ;;  %v899_v5 = vpop.f32.mrf.mxu1 }
 0x33d   : > { %v1566_v15 = vpop.eup %1565  ;;  %v1492_v63 = vmul.f32 -1.442695, %v898_v13 }
 0x33e   : > { %v1084_v16 = vadd.f32 1.0, %v1566_v15  ;;  %1210 = vperm.xlu1 %1522, %v1564_v11   ;;  %v902_v17 = vpop.f32.mrf.mxu1 }
 0x33f   : > { %1579 = vpow2.f32 %v1492_v63  ;;  %v903_v52 = vadd.f32 %v902_v17, %v736_v14  ;;  %v744_v14 = vld [vmem:[%s2734_s5 + $0xc8] sm:$0xff] }
 0x340   : > { %v1568_v49 = vpop.eup %1567  ;;  %1581 = vrcp.f32 %v1084_v16  ;;  %v904_v18 = vpop.f32.mrf.mxu1 }
 0x341   : > { %v1570_v42 = vpop.eup %1569  ;;  %v1493_v19 = vmul.f32 -1.442695, %v903_v52  ;;  %1215 = vperm.xlu0 %1521, %v1568_v49  }
 0x342   : > { %v1085_v34 = vadd.f32 1.0, %v1570_v42  ;;  %v907_v26 = vpop.f32.mrf.mxu1 }
 0x343   : > { %1583 = vpow2.f32 %v1493_v19  ;;  %v908_v21 = vadd.f32 %v907_v26, %v737_v47  ;;  %v745_v47 = vld [vmem:[%s2734_s5 + $0xd0] sm:$0xff] }
 0x344   : > { %v1572_v22 = vpop.eup %1571  ;;  %1585 = vrcp.f32 %v1085_v34  ;;  %v909_v20 = vpop.f32.mrf.mxu1 }
 0x345   : > { %v1574_v24 = vpop.eup %1573  ;;  %v1494_v25 = vmul.f32 -1.442695, %v908_v21  ;;  %1220 = vperm.xlu1 %1522, %v1572_v22  }
 0x346   : > { %v1086_v27 = vadd.f32 1.0, %v1574_v24  ;;  %v912_v28 = vpop.f32.mrf.mxu1 }
 0x347   : > { %1587 = vpow2.f32 %v1494_v25  ;;  %v913_v29 = vadd.f32 %v912_v28, %v738_v23  ;;  %v746_v23 = vld [vmem:[%s2734_s5 + $0xd8] sm:$0xff] }
 0x348   : > { %v1576_v30 = vpop.eup %1575  ;;  %1589 = vrcp.f32 %v1086_v27  ;;  %v914_v31 = vpop.f32.mrf.mxu1 }
 0x349   : > { %v1578_v33 = vpop.eup %1577  ;;  %v1495_v35 = vmul.f32 -1.442695, %v913_v29  ;;  %1225 = vperm.xlu0 %1521, %v1576_v30  }
 0x34a   : > { %v1087_v36 = vadd.f32 1.0, %v1578_v33  ;;  %v917_v37 = vpop.f32.mrf.mxu1 }
 0x34b   : > { %1591 = vpow2.f32 %v1495_v35  ;;  %v918_v38 = vadd.f32 %v917_v37, %v739_v32  ;;  %v747_v32 = vld [vmem:[%s2734_s5 + $0xe0] sm:$0xff] }
 0x34c   : > { %v1580_v39 = vpop.eup %1579  ;;  %1593 = vrcp.f32 %v1087_v36  ;;  %v919_v40 = vpop.f32.mrf.mxu1 }
 0x34d   : > { %v1582_v43 = vpop.eup %1581  ;;  %v1088_v44 = vadd.f32 1.0, %v1580_v39  ;;  %v1496_v45 = vmul.f32 -1.442695, %v918_v38 }
 0x34e   : > { %1230 = vperm.xlu1 %1522, %v1582_v43   ;;  %v922_v46 = vpop.f32.mrf.mxu1 }
 0x34f   : > { %1595 = vrcp.f32 %v1088_v44  ;;  %v923_v48 = vadd.f32 %v922_v46, %v740_v41  ;;  %v748_v41 = vld [vmem:[%s2734_s5 + $0xe8] sm:$0xff] }
 0x350   : > { %v1584_v10 = vpop.eup %1583  ;;  %1597 = vpow2.f32 %v1496_v45  ;;  %v924_v50 = vpop.f32.mrf.mxu1 }
 0x351   : > { %v1586_v56 = vpop.eup %1585  ;;  %v1089_v58 = vadd.f32 1.0, %v1584_v10  ;;  %v1497_v60 = vmul.f32 -1.442695, %v923_v48 }
 0x352   : > { %1235 = vperm.xlu0 %1521, %v1586_v56   ;;  %v927_v59 = vpop.f32.mrf.mxu1 }
 0x353   : > { %1599 = vrcp.f32 %v1089_v58  ;;  %v928_v61 = vadd.f32 %v927_v59, %v741_v54  ;;  %v749_v54 = vld [vmem:[%s2734_s5 + $0xf0] sm:$0xff] }
 0x354   : > { %v1588_v62 = vpop.eup %1587  ;;  %1601 = vpow2.f32 %v1497_v60  ;;  %v929_v57 = vpop.f32.mrf.mxu1 }
 0x355   : > { %v1590_v1 = vpop.eup %1589  ;;  %v1090_v2 = vadd.f32 1.0, %v1588_v62  ;;  %v1498_v55 = vmul.f32 -1.442695, %v928_v61 }
 0x356   : > { %1240 = vperm.xlu1 %1522, %v1590_v1   ;;  %v932_v3 = vpop.f32.mrf.mxu1 }
 0x357   : > { %1603 = vrcp.f32 %v1090_v2  ;;  %v933_v4 = vadd.f32 %v932_v3, %v742_v0  ;;  %v750_v0 = vld [vmem:[%s2734_s5 + $0xf8] sm:$0xff] }
 0x358   : > { %v1592_v53 = vpop.eup %1591  ;;  %1605 = vpow2.f32 %v1498_v55  ;;  %v934_v6 = vpop.f32.mrf.mxu1 }
 0x359   : > { %v1594_v8 = vpop.eup %1593  ;;  %v1091_v51 = vadd.f32 1.0, %v1592_v53  ;;  %v1499_v9 = vmul.f32 -1.442695, %v933_v4 }
 0x35a   : > { %1245 = vperm.xlu0 %1521, %v1594_v8   ;;  %v937_v12 = vpop.f32.mrf.mxu1 }
 0x35b   : > { %1607 = vrcp.f32 %v1091_v51  ;;  %v938_v13 = vadd.f32 %v937_v12, %v743_v7 }
 0x35c   : > { %v1596_v11 = vpop.eup %1595  ;;  %1609 = vpow2.f32 %v1499_v9  ;;  %v939_v5 = vpop.f32.mrf.mxu1 }
 0x35d   : > { %v1598_v15 = vpop.eup %1597  ;;  %v1500_v63 = vmul.f32 -1.442695, %v938_v13  ;;  %1250 = vperm.xlu1 %1522, %v1596_v11  }
 0x35e   : > { %v1092_v16 = vadd.f32 1.0, %v1598_v15  ;;  %v942_v17 = vpop.f32.mrf.mxu1 }
 0x35f   : > { %1611 = vpow2.f32 %v1500_v63  ;;  %v943_v52 = vadd.f32 %v942_v17, %v744_v14 }
 0x360   : > { %v1600_v49 = vpop.eup %1599  ;;  %1613 = vrcp.f32 %v1092_v16  ;;  %v944_v18 = vpop.f32.mrf.mxu1 }
 0x361   : > { %v1602_v42 = vpop.eup %1601  ;;  %v1501_v19 = vmul.f32 -1.442695, %v943_v52  ;;  %1255 = vperm.xlu0 %1521, %v1600_v49  }
 0x362   : > { %v1093_v34 = vadd.f32 1.0, %v1602_v42  ;;  %v947_v26 = vpop.f32.mrf.mxu1 }
 0x363   : > { %1615 = vpow2.f32 %v1501_v19  ;;  %v948_v21 = vadd.f32 %v947_v26, %v745_v47  ;;  %v1651_v26 = vld [vmem:[%s1772_s26] sm:$0xff] }
 0x364   : > { %v1604_v22 = vpop.eup %1603  ;;  %1617 = vrcp.f32 %v1093_v34  ;;  %v949_v20 = vpop.f32.mrf.mxu1 }
 0x365   : > { %v1606_v24 = vpop.eup %1605  ;;  %v1502_v25 = vmul.f32 -1.442695, %v948_v21  ;;  %1260 = vperm.xlu1 %1522, %v1604_v22   ;;  %v1652_v22 = vld [vmem:[%s1772_s26 + $0x8] sm:$0xff] }
 0x366   : > { %v1094_v27 = vadd.f32 1.0, %v1606_v24  ;;  %v952_v28 = vpop.f32.mrf.mxu1  ;;  %v1653_v24 = vld [vmem:[%s1772_s26 + $0x10] sm:$0xff] }
 0x367   : > { %1619 = vpow2.f32 %v1502_v25  ;;  %v953_v29 = vadd.f32 %v952_v28, %v746_v23 }
 0x368   : > { %v1608_v30 = vpop.eup %1607  ;;  %1621 = vrcp.f32 %v1094_v27  ;;  %v954_v31 = vpop.f32.mrf.mxu1  ;;  %v1654_v27 = vld [vmem:[%s1772_s26 + $0x18] sm:$0xff] }
 0x369   : > { %v1610_v33 = vpop.eup %1609  ;;  %v1503_v35 = vmul.f32 -1.442695, %v953_v29  ;;  %1265 = vperm.xlu0 %1521, %v1608_v30   ;;  %v1655_v30 = vld [vmem:[%s1772_s26 + $0x20] sm:$0xff] }
 0x36a   : > { %v1095_v36 = vadd.f32 1.0, %v1610_v33  ;;  %v957_v37 = vpop.f32.mrf.mxu1 }
 0x36b   : > { %1623 = vpow2.f32 %v1503_v35  ;;  %v958_v38 = vadd.f32 %v957_v37, %v747_v32  ;;  %v1656_v32 = vld [vmem:[%s1772_s26 + $0x28] sm:$0xff] }
 0x36c   : > { %v1612_v39 = vpop.eup %1611  ;;  %1625 = vrcp.f32 %v1095_v36  ;;  %v959_v40 = vpop.f32.mrf.mxu1  ;;  %v1657_v36 = vld [vmem:[%s1772_s26 + $0x30] sm:$0xff] }
 0x36d   : > { %v1614_v43 = vpop.eup %1613  ;;  %v1096_v44 = vadd.f32 1.0, %v1612_v39  ;;  %v1504_v45 = vmul.f32 -1.442695, %v958_v38  ;;  %v1658_v38 = vld [vmem:[%s1772_s26 + $0x38] sm:$0xff] }
 0x36e   : > { %1270 = vperm.xlu1 %1522, %v1614_v43   ;;  %v962_v46 = vpop.f32.mrf.mxu1 }
 0x36f   : > { %1627 = vrcp.f32 %v1096_v44  ;;  %v963_v48 = vadd.f32 %v962_v46, %v748_v41  ;;  %v1659_v41 = vld [vmem:[%s1772_s26 + $0x40] sm:$0xff]  ;;  %v1660_v44 = vld [vmem:[%s1772_s26 + $0x48] sm:$0xff] }
 0x370   : > { %v1616_v10 = vpop.eup %1615  ;;  %1629 = vpow2.f32 %v1504_v45  ;;  %v964_v50 = vpop.f32.mrf.mxu1 }
 0x371   : > { %v1618_v56 = vpop.eup %1617  ;;  %v1097_v58 = vadd.f32 1.0, %v1616_v10  ;;  %v1505_v60 = vmul.f32 -1.442695, %v963_v48  ;;  %v1661_v48 = vld [vmem:[%s1772_s26 + $0x50] sm:$0xff]  ;;  %v1662_v50 = vld [vmem:[%s1772_s26 + $0x58] sm:$0xff] }
 0x372   : > { %1275 = vperm.xlu0 %1521, %v1618_v56   ;;  %v967_v59 = vpop.f32.mrf.mxu1 }
 0x373   : > { %1631 = vrcp.f32 %v1097_v58  ;;  %v968_v61 = vadd.f32 %v967_v59, %v749_v54  ;;  %v1663_v58 = vld [vmem:[%s1772_s26 + $0x60] sm:$0xff]  ;;  %v1664_v59 = vld [vmem:[%s1772_s26 + $0x68] sm:$0xff] }
 0x374   : > { %v1620_v62 = vpop.eup %1619  ;;  %1633 = vpow2.f32 %v1505_v60  ;;  %v969_v57 = vpop.f32.mrf.mxu1 }
 0x375   : > { %v1622_v1 = vpop.eup %1621  ;;  %v1098_v2 = vadd.f32 1.0, %v1620_v62  ;;  %v1506_v55 = vmul.f32 -1.442695, %v968_v61  ;;  %v1665_v57 = vld [vmem:[%s1772_s26 + $0x70] sm:$0xff] }
 0x376   : > { %1280 = vperm.xlu1 %1522, %v1622_v1   ;;  %v972_v3 = vpop.f32.mrf.mxu1  ;;  %v1666_v1 = vld [vmem:[%s1772_s26 + $0x78] sm:$0xff] }
 0x377   : > { %1635 = vrcp.f32 %v1098_v2  ;;  %v973_v4 = vadd.f32 %v972_v3, %v750_v0  ;;  %v1667_v3 = vld [vmem:[%s1772_s26 + $0x80] sm:$0xff] }
 0x378   : > { %v1624_v53 = vpop.eup %1623  ;;  %1637 = vpow2.f32 %v1506_v55  ;;  %v974_v6 = vpop.f32.mrf.mxu1 }
 0x379   : > { %v1626_v7 = vpop.eup %1625  ;;  %v1099_v8 = vadd.f32 1.0, %v1624_v53  ;;  %v1507_v51 = vmul.f32 -1.442695, %v973_v4  ;;  %v1668_v53 = vld [vmem:[%s1772_s26 + $0x88] sm:$0xff] }
 0x37a   : > { %1285 = vperm.xlu0 %1521, %v1626_v7  }
 0x37b   : > { %1639 = vrcp.f32 %v1099_v8  ;;  %v1669_v8 = vld [vmem:[%s1772_s26 + $0x90] sm:$0xff] }
 0x37c   : > { %v1628_v9 = vpop.eup %1627  ;;  %1641 = vpow2.f32 %v1507_v51 }
 0x37d   : > { %v1630_v12 = vpop.eup %1629  ;;  %1290 = vperm.xlu1 %1522, %v1628_v9   ;;  %v1670_v9 = vld [vmem:[%s1772_s26 + $0x98] sm:$0xff] }
 0x37e   : > { %v1100_v13 = vadd.f32 1.0, %v1630_v12 }
 0x380   : > { %v1632_v11 = vpop.eup %1631  ;;  %1643 = vrcp.f32 %v1100_v13 }
 0x381   : > { %v1634_v5 = vpop.eup %1633  ;;  %1295 = vperm.xlu0 %1521, %v1632_v11   ;;  %v1671_v11 = vld [vmem:[%s1772_s26 + $0xa0] sm:$0xff] }
 0x382   : > { %v1101_v14 = vadd.f32 1.0, %v1634_v5 }
 0x384   : > { %v1636_v15 = vpop.eup %1635  ;;  %1645 = vrcp.f32 %v1101_v14  ;;  %v1672_v14 = vld [vmem:[%s1772_s26 + $0xa8] sm:$0xff] }
 0x385   : > { %v1638_v63 = vpop.eup %1637  ;;  %1300 = vperm.xlu1 %1522, %v1636_v15  }
 0x386   : > { %v1102_v16 = vadd.f32 1.0, %v1638_v63 }
 0x388   : > { %v1640_v17 = vpop.eup %1639  ;;  %1647 = vrcp.f32 %v1102_v16  ;;  %v1673_v16 = vld [vmem:[%s1772_s26 + $0xb0] sm:$0xff] }
 0x389   : > { %v1642_v52 = vpop.eup %1641  ;;  %1305 = vperm.xlu0 %1521, %v1640_v17  }
 0x38a   : > { %v1103_v49 = vadd.f32 1.0, %v1642_v52  ;;  %v1674_v52 = vld [vmem:[%s1772_s26 + $0xb8] sm:$0xff] }
 0x38c   : > { %1649 = vrcp.f32 %v1103_v49 }
 0x38d   : > { %v1644_v18 = vpop.eup %1643 }
 0x38e   : > { %1310 = vperm.xlu1 %1522, %v1644_v18  }
 0x391   : > { %v1646_v47 = vpop.eup %1645 }
 0x392   : > { %1315 = vperm.xlu0 %1521, %v1646_v47   ;;  %v1675_v47 = vld [vmem:[%s1772_s26 + $0xc0] sm:$0xff] }
 0x395   : > { %v1648_v42 = vpop.eup %1647 }
 0x396   : > { %1320 = vperm.xlu1 %1522, %v1648_v42  }
 0x398   : > { %v1171_v19 = vpop.permute.xlu0 %1170 }
 0x399   : > { %v1650_v34 = vpop.eup %1649  ;;  %v1328_v21 = vmul.f32 %v1651_v26, %v1171_v19  ;;  %v1329_v20 = vmul.f32 %v1652_v22, %v1171_v19  ;;  %v1676_v19 = vld [vmem:[%s1772_s26 + $0xc8] sm:$0xff] }
 0x39a   : > { %1325 = vperm.xlu0 %1521, %v1650_v34  }
 0x39b   : > { %1394 = vst [vmem:[%s2596_s14] sm:$0xff] %v1328_v21  ;;  %1395 = vst [vmem:[%s2596_s14 + $0x8] sm:$0xff] %v1329_v20  ;;  %v1677_v21 = vld [vmem:[%s1772_s26 + $0xd0] sm:$0xff]  ;;  %v1678_v20 = vld [vmem:[%s1772_s26 + $0xd8] sm:$0xff] }
 0x39c   : > { %v1176_v23 = vpop.permute.xlu1 %1175 }
 0x39d   : > { %v1330_v25 = vmul.f32 %v1653_v24, %v1176_v23  ;;  %v1331_v28 = vmul.f32 %v1654_v27, %v1176_v23 }
 0x39f   : > { %1396 = vst [vmem:[%s2596_s14 + $0x10] sm:$0xff] %v1330_v25  ;;  %1397 = vst [vmem:[%s2596_s14 + $0x18] sm:$0xff] %v1331_v28  ;;  %v1679_v25 = vld [vmem:[%s1772_s26 + $0xe0] sm:$0xff]  ;;  %v1680_v28 = vld [vmem:[%s1772_s26 + $0xe8] sm:$0xff] }
 0x3a0   : > { %v1181_v29 = vpop.permute.xlu1 %1180 }
 0x3a1   : > { %v1332_v31 = vmul.f32 %v1655_v30, %v1181_v29  ;;  %v1333_v33 = vmul.f32 %v1656_v32, %v1181_v29 }
 0x3a3   : > { %1398 = vst [vmem:[%s2596_s14 + $0x20] sm:$0xff] %v1332_v31  ;;  %1399 = vst [vmem:[%s2596_s14 + $0x28] sm:$0xff] %v1333_v33  ;;  %v1681_v31 = vld [vmem:[%s1772_s26 + $0xf0] sm:$0xff]  ;;  %v1682_v33 = vld [vmem:[%s1772_s26 + $0xf8] sm:$0xff] }
 0x3a4   : > { %v1186_v35 = vpop.permute.xlu1 %1185 }
 0x3a5   : > { %v1334_v37 = vmul.f32 %v1657_v36, %v1186_v35  ;;  %v1335_v39 = vmul.f32 %v1658_v38, %v1186_v35 }
 0x3a7   : > { %1400 = vst [vmem:[%s2596_s14 + $0x30] sm:$0xff] %v1334_v37  ;;  %1401 = vst [vmem:[%s2596_s14 + $0x38] sm:$0xff] %v1335_v39  ;;  %v1683_v37 = vld [vmem:[%s1772_s26 + $0x100] sm:$0xff]  ;;  %v1684_v39 = vld [vmem:[%s1772_s26 + $0x108] sm:$0xff] }
 0x3a9   : > { %v1191_v40 = vpop.permute.xlu1 %1190 }
 0x3aa   : > { %v1336_v43 = vmul.f32 %v1659_v41, %v1191_v40  ;;  %v1337_v45 = vmul.f32 %v1660_v44, %v1191_v40 }
 0x3ac   : > { %1402 = vst [vmem:[%s2596_s14 + $0x40] sm:$0xff] %v1336_v43  ;;  %1403 = vst [vmem:[%s2596_s14 + $0x48] sm:$0xff] %v1337_v45  ;;  %v1685_v43 = vld [vmem:[%s1772_s26 + $0x110] sm:$0xff]  ;;  %v1686_v45 = vld [vmem:[%s1772_s26 + $0x118] sm:$0xff] }
 0x3ad   : > { %v1196_v46 = vpop.permute.xlu1 %1195 }
 0x3ae   : > { %v1338_v10 = vmul.f32 %v1661_v48, %v1196_v46  ;;  %v1339_v54 = vmul.f32 %v1662_v50, %v1196_v46 }
 0x3b0   : > { %1404 = vst [vmem:[%s2596_s14 + $0x50] sm:$0xff] %v1338_v10  ;;  %1405 = vst [vmem:[%s2596_s14 + $0x58] sm:$0xff] %v1339_v54  ;;  %v1687_v10 = vld [vmem:[%s1772_s26 + $0x120] sm:$0xff]  ;;  %v1688_v54 = vld [vmem:[%s1772_s26 + $0x128] sm:$0xff] }
 0x3b1   : > { %v1201_v56 = vpop.permute.xlu1 %1200 }
 0x3b2   : > { %v1340_v60 = vmul.f32 %v1663_v58, %v1201_v56  ;;  %v1341_v61 = vmul.f32 %v1664_v59, %v1201_v56 }
 0x3b4   : > { %1406 = vst [vmem:[%s2596_s14 + $0x60] sm:$0xff] %v1340_v60  ;;  %1407 = vst [vmem:[%s2596_s14 + $0x68] sm:$0xff] %v1341_v61  ;;  %v1689_v60 = vld [vmem:[%s1772_s26 + $0x130] sm:$0xff]  ;;  %v1690_v61 = vld [vmem:[%s1772_s26 + $0x138] sm:$0xff] }
 0x3b5   : > { %v1206_v62 = vpop.permute.xlu1 %1205 }
 0x3b6   : > { %v1342_v0 = vmul.f32 %v1665_v57, %v1206_v62  ;;  %v1343_v2 = vmul.f32 %v1666_v1, %v1206_v62 }
 0x3b8   : > { %1408 = vst [vmem:[%s2596_s14 + $0x70] sm:$0xff] %v1342_v0  ;;  %1409 = vst [vmem:[%s2596_s14 + $0x78] sm:$0xff] %v1343_v2  ;;  %v1691_v0 = vld [vmem:[%s1772_s26 + $0x140] sm:$0xff]  ;;  %v1692_v2 = vld [vmem:[%s1772_s26 + $0x148] sm:$0xff] }
 0x3b9   : > { %v1211_v55 = vpop.permute.xlu1 %1210 }
 0x3ba   : > { %v1344_v4 = vmul.f32 %v1667_v3, %v1211_v55  ;;  %v1345_v6 = vmul.f32 %v1668_v53, %v1211_v55 }
 0x3bc   : > { %1410 = vst [vmem:[%s2596_s14 + $0x80] sm:$0xff] %v1344_v4  ;;  %1411 = vst [vmem:[%s2596_s14 + $0x88] sm:$0xff] %v1345_v6  ;;  %v1216_v7 = vpop.permute.xlu0 %1215  ;;  %v1693_v4 = vld [vmem:[%s1772_s26 + $0x150] sm:$0xff]  ;;  %v1694_v6 = vld [vmem:[%s1772_s26 + $0x158] sm:$0xff] }
 0x3bd   : > { %v1346_v51 = vmul.f32 %v1669_v8, %v1216_v7  ;;  %v1347_v12 = vmul.f32 %v1670_v9, %v1216_v7 }
 0x3bf   : > { %1412 = vst [vmem:[%s2596_s14 + $0x90] sm:$0xff] %v1346_v51  ;;  %1413 = vst [vmem:[%s2596_s14 + $0x98] sm:$0xff] %v1347_v12  ;;  %v1695_v51 = vld [vmem:[%s1772_s26 + $0x160] sm:$0xff]  ;;  %v1696_v12 = vld [vmem:[%s1772_s26 + $0x168] sm:$0xff] }
 0x3c0   : > { %v1221_v13 = vpop.permute.xlu1 %1220 }
 0x3c1   : > { %v1348_v5 = vmul.f32 %v1671_v11, %v1221_v13  ;;  %v1349_v15 = vmul.f32 %v1672_v14, %v1221_v13 }
 0x3c3   : > { %1414 = vst [vmem:[%s2596_s14 + $0xa0] sm:$0xff] %v1348_v5  ;;  %1415 = vst [vmem:[%s2596_s14 + $0xa8] sm:$0xff] %v1349_v15  ;;  %v1697_v5 = vld [vmem:[%s1772_s26 + $0x170] sm:$0xff]  ;;  %v1698_v15 = vld [vmem:[%s1772_s26 + $0x178] sm:$0xff] }
 0x3c4   : > { %v1226_v63 = vpop.permute.xlu0 %1225 }
 0x3c5   : > { %v1350_v17 = vmul.f32 %v1673_v16, %v1226_v63  ;;  %v1351_v49 = vmul.f32 %v1674_v52, %v1226_v63 }
 0x3c7   : > { %1416 = vst [vmem:[%s2596_s14 + $0xb0] sm:$0xff] %v1350_v17  ;;  %1417 = vst [vmem:[%s2596_s14 + $0xb8] sm:$0xff] %v1351_v49  ;;  %v1699_v17 = vld [vmem:[%s1772_s26 + $0x180] sm:$0xff]  ;;  %v1700_v49 = vld [vmem:[%s1772_s26 + $0x188] sm:$0xff] }
 0x3c9   : > { %v1231_v18 = vpop.permute.xlu1 %1230 }
 0x3ca   : > { %v1352_v42 = vmul.f32 %v1675_v47, %v1231_v18  ;;  %v1353_v34 = vmul.f32 %v1676_v19, %v1231_v18 }
 0x3cc   : > { %1418 = vst [vmem:[%s2596_s14 + $0xc0] sm:$0xff] %v1352_v42  ;;  %1419 = vst [vmem:[%s2596_s14 + $0xc8] sm:$0xff] %v1353_v34  ;;  %v1701_v42 = vld [vmem:[%s1772_s26 + $0x190] sm:$0xff]  ;;  %v1702_v34 = vld [vmem:[%s1772_s26 + $0x198] sm:$0xff] }
 0x3cd   : > { %v1236_v26 = vpop.permute.xlu0 %1235 }
 0x3ce   : > { %v1354_v22 = vmul.f32 %v1677_v21, %v1236_v26  ;;  %v1355_v23 = vmul.f32 %v1678_v20, %v1236_v26 }
 0x3d0   : > { %1420 = vst [vmem:[%s2596_s14 + $0xd0] sm:$0xff] %v1354_v22  ;;  %1421 = vst [vmem:[%s2596_s14 + $0xd8] sm:$0xff] %v1355_v23  ;;  %v1703_v22 = vld [vmem:[%s1772_s26 + $0x1a0] sm:$0xff]  ;;  %v1704_v23 = vld [vmem:[%s1772_s26 + $0x1a8] sm:$0xff] }
 0x3d1   : > { %v1241_v24 = vpop.permute.xlu1 %1240 }
 0x3d2   : > { %v1356_v27 = vmul.f32 %v1679_v25, %v1241_v24  ;;  %v1357_v29 = vmul.f32 %v1680_v28, %v1241_v24 }
 0x3d4   : > { %1422 = vst [vmem:[%s2596_s14 + $0xe0] sm:$0xff] %v1356_v27  ;;  %1423 = vst [vmem:[%s2596_s14 + $0xe8] sm:$0xff] %v1357_v29  ;;  %v1705_v27 = vld [vmem:[%s1772_s26 + $0x1b0] sm:$0xff]  ;;  %v1706_v29 = vld [vmem:[%s1772_s26 + $0x1b8] sm:$0xff] }
 0x3d5   : > { %v1246_v30 = vpop.permute.xlu0 %1245 }
 0x3d6   : > { %v1358_v32 = vmul.f32 %v1681_v31, %v1246_v30  ;;  %v1359_v35 = vmul.f32 %v1682_v33, %v1246_v30 }
 0x3d8   : > { %1424 = vst [vmem:[%s2596_s14 + $0xf0] sm:$0xff] %v1358_v32  ;;  %1425 = vst [vmem:[%s2596_s14 + $0xf8] sm:$0xff] %v1359_v35  ;;  %v1251_v36 = vpop.permute.xlu1 %1250  ;;  %v1707_v32 = vld [vmem:[%s1772_s26 + $0x1c0] sm:$0xff]  ;;  %v1708_v35 = vld [vmem:[%s1772_s26 + $0x1c8] sm:$0xff] }
 0x3d9   : > { %v1360_v38 = vmul.f32 %v1683_v37, %v1251_v36  ;;  %v1361_v40 = vmul.f32 %v1684_v39, %v1251_v36 }
 0x3db   : > { %1426 = vst [vmem:[%s2596_s14 + $0x100] sm:$0xff] %v1360_v38  ;;  %1427 = vst [vmem:[%s2596_s14 + $0x108] sm:$0xff] %v1361_v40  ;;  %v1709_v38 = vld [vmem:[%s1772_s26 + $0x1d0] sm:$0xff]  ;;  %v1710_v40 = vld [vmem:[%s1772_s26 + $0x1d8] sm:$0xff] }
 0x3dc   : > { %v1256_v41 = vpop.permute.xlu0 %1255 }
 0x3dd   : > { %v1362_v44 = vmul.f32 %v1685_v43, %v1256_v41  ;;  %v1363_v46 = vmul.f32 %v1686_v45, %v1256_v41 }
 0x3df   : > { %1428 = vst [vmem:[%s2596_s14 + $0x110] sm:$0xff] %v1362_v44  ;;  %1429 = vst [vmem:[%s2596_s14 + $0x118] sm:$0xff] %v1363_v46  ;;  %v1711_v44 = vld [vmem:[%s1772_s26 + $0x1e0] sm:$0xff]  ;;  %v1712_v46 = vld [vmem:[%s1772_s26 + $0x1e8] sm:$0xff] }
 0x3e0   : > { %v1261_v48 = vpop.permute.xlu1 %1260 }
 0x3e1   : > { %v1364_v50 = vmul.f32 %v1687_v10, %v1261_v48  ;;  %v1365_v56 = vmul.f32 %v1688_v54, %v1261_v48 }
 0x3e3   : > { %1430 = vst [vmem:[%s2596_s14 + $0x120] sm:$0xff] %v1364_v50  ;;  %1431 = vst [vmem:[%s2596_s14 + $0x128] sm:$0xff] %v1365_v56  ;;  %v1713_v50 = vld [vmem:[%s1772_s26 + $0x1f0] sm:$0xff]  ;;  %v1714_v56 = vld [vmem:[%s1772_s26 + $0x1f8] sm:$0xff] }
 0x3e4   : > { %v1266_v58 = vpop.permute.xlu0 %1265 }
 0x3e5   : > { %v1366_v59 = vmul.f32 %v1689_v60, %v1266_v58  ;;  %v1367_v62 = vmul.f32 %v1690_v61, %v1266_v58 }
 0x3e7   : > { %1432 = vst [vmem:[%s2596_s14 + $0x130] sm:$0xff] %v1366_v59  ;;  %1433 = vst [vmem:[%s2596_s14 + $0x138] sm:$0xff] %v1367_v62 }
 0x3e9   : > { %v1271_v57 = vpop.permute.xlu1 %1270 }
 0x3ea   : > { %v1368_v1 = vmul.f32 %v1691_v0, %v1271_v57  ;;  %v1369_v55 = vmul.f32 %v1692_v2, %v1271_v57 }
 0x3ec   : > { %1434 = vst [vmem:[%s2596_s14 + $0x140] sm:$0xff] %v1368_v1  ;;  %1435 = vst [vmem:[%s2596_s14 + $0x148] sm:$0xff] %v1369_v55 }
 0x3ed   : > { %v1276_v3 = vpop.permute.xlu0 %1275 }
 0x3ee   : > { %v1370_v53 = vmul.f32 %v1693_v4, %v1276_v3  ;;  %v1371_v7 = vmul.f32 %v1694_v6, %v1276_v3 }
 0x3f0   : > { %1436 = vst [vmem:[%s2596_s14 + $0x150] sm:$0xff] %v1370_v53  ;;  %1437 = vst [vmem:[%s2596_s14 + $0x158] sm:$0xff] %v1371_v7 }
 0x3f1   : > { %v1281_v8 = vpop.permute.xlu1 %1280 }
 0x3f2   : > { %v1372_v9 = vmul.f32 %v1695_v51, %v1281_v8  ;;  %v1373_v13 = vmul.f32 %v1696_v12, %v1281_v8 }
 0x3f4   : > { %1438 = vst [vmem:[%s2596_s14 + $0x160] sm:$0xff] %v1372_v9  ;;  %1439 = vst [vmem:[%s2596_s14 + $0x168] sm:$0xff] %v1373_v13 }
 0x3f5   : > { %v1286_v11 = vpop.permute.xlu0 %1285 }
 0x3f6   : > { %v1374_v14 = vmul.f32 %v1697_v5, %v1286_v11  ;;  %v1375_v63 = vmul.f32 %v1698_v15, %v1286_v11 }
 0x3f8   : > { %1440 = vst [vmem:[%s2596_s14 + $0x170] sm:$0xff] %v1374_v14  ;;  %1441 = vst [vmem:[%s2596_s14 + $0x178] sm:$0xff] %v1375_v63  ;;  %v1291_v16 = vpop.permute.xlu1 %1290 }
 0x3f9   : > { %v1376_v52 = vmul.f32 %v1699_v17, %v1291_v16  ;;  %v1377_v18 = vmul.f32 %v1700_v49, %v1291_v16 }
 0x3fb   : > { %1442 = vst [vmem:[%s2596_s14 + $0x180] sm:$0xff] %v1376_v52  ;;  %1443 = vst [vmem:[%s2596_s14 + $0x188] sm:$0xff] %v1377_v18 }
 0x3fc   : > { %v1296_v47 = vpop.permute.xlu0 %1295 }
 0x3fd   : > { %v1378_v19 = vmul.f32 %v1701_v42, %v1296_v47  ;;  %v1379_v26 = vmul.f32 %v1702_v34, %v1296_v47 }
 0x3ff   : > { %1444 = vst [vmem:[%s2596_s14 + $0x190] sm:$0xff] %v1378_v19  ;;  %1445 = vst [vmem:[%s2596_s14 + $0x198] sm:$0xff] %v1379_v26 }
 0x400   : > { %v1301_v21 = vpop.permute.xlu1 %1300 }
 0x401   : > { %v1380_v20 = vmul.f32 %v1703_v22, %v1301_v21  ;;  %v1381_v24 = vmul.f32 %v1704_v23, %v1301_v21 }
 0x403   : > { %1446 = vst [vmem:[%s2596_s14 + $0x1a0] sm:$0xff] %v1380_v20  ;;  %1447 = vst [vmem:[%s2596_s14 + $0x1a8] sm:$0xff] %v1381_v24 }
 0x404   : > { %v1306_v25 = vpop.permute.xlu0 %1305 }
 0x405   : > { %v1382_v28 = vmul.f32 %v1705_v27, %v1306_v25  ;;  %v1383_v30 = vmul.f32 %v1706_v29, %v1306_v25 }
 0x407   : > { %1448 = vst [vmem:[%s2596_s14 + $0x1b0] sm:$0xff] %v1382_v28  ;;  %1449 = vst [vmem:[%s2596_s14 + $0x1b8] sm:$0xff] %v1383_v30 }
 0x409   : > { %v1311_v31 = vpop.permute.xlu1 %1310 }
 0x40a   : > { %v1384_v33 = vmul.f32 %v1707_v32, %v1311_v31  ;;  %v1385_v36 = vmul.f32 %v1708_v35, %v1311_v31 }
 0x40c   : > { %1450 = vst [vmem:[%s2596_s14 + $0x1c0] sm:$0xff] %v1384_v33  ;;  %1451 = vst [vmem:[%s2596_s14 + $0x1c8] sm:$0xff] %v1385_v36 }
 0x40d   : > { %v1316_v37 = vpop.permute.xlu0 %1315 }
 0x40e   : > { %v1386_v39 = vmul.f32 %v1709_v38, %v1316_v37  ;;  %v1387_v41 = vmul.f32 %v1710_v40, %v1316_v37 }
 0x410   : > { %1452 = vst [vmem:[%s2596_s14 + $0x1d0] sm:$0xff] %v1386_v39  ;;  %1453 = vst [vmem:[%s2596_s14 + $0x1d8] sm:$0xff] %v1387_v41 }
 0x411   : > { %v1321_v43 = vpop.permute.xlu1 %1320 }
 0x412   : > { %v1388_v45 = vmul.f32 %v1711_v44, %v1321_v43  ;;  %v1389_v48 = vmul.f32 %v1712_v46, %v1321_v43 }
 0x414   : > { %1454 = vst [vmem:[%s2596_s14 + $0x1e0] sm:$0xff] %v1388_v45  ;;  %1455 = vst [vmem:[%s2596_s14 + $0x1e8] sm:$0xff] %v1389_v48  ;;  %27 = sbr.rel (!%p25_p0) target bundleno = 1 (0x1), region = 54 }
 0x415   : > { %v1326_v10 = vpop.permute.xlu0 %1325 }
 0x416   : > { %v1390_v54 = vmul.f32 %v1713_v50, %v1326_v10  ;;  %v1391_v58 = vmul.f32 %v1714_v56, %v1326_v10 }
 0x418   : > { %1456 = vst [vmem:[%s2596_s14 + $0x1f0] sm:$0xff] %v1390_v54  ;;  %1457 = vst [vmem:[%s2596_s14 + $0x1f8] sm:$0xff] %v1391_v58 }

</bundles_post_ra>
